<compile_context>
chip_gen: v6e
topology: v6e:2x2x1
jax: 0.10.0
libtpu: 0.0.40
codegen_flags: <defaults>
</compile_context>

<pallas_src>
import functools

import jax
import jax.numpy as jnp
import numpy as np
from jax.experimental import pallas as pl
from jax.experimental.pallas import tpu as pltpu


# --------------------- pass 1: q/k/v conv projections -----------------------
def _qkv_proj_kernel(p_ref, wq_ref, bq_ref, wkv_ref, bkv_ref, q_ref, kv_ref):
    # p_ref  : (1, C*9, tn)  im2col patches (bf16), N on lanes
    # wq_ref : (Cq, C*9) bf16     bq_ref : (Cq, 1) f32
    # wkv_ref: (C+Cq, C*9) bf16   bkv_ref: (C+Cq, 1) f32  (value rows first, key rows after)
    # q_ref  : (1, Cq, tn) bf16   kv_ref : (1, C+Cq, tn) bf16
    p = p_ref[0]
    q_ref[0] = (jnp.dot(wq_ref[...], p, preferred_element_type=jnp.float32)
                + bq_ref[...]).astype(q_ref.dtype)
    kv_ref[0] = (jnp.dot(wkv_ref[...], p, preferred_element_type=jnp.float32)
                 + bkv_ref[...]).astype(kv_ref.dtype)


# ------------------- pass 2: flash-style tiled attention --------------------
def _flash_attention_kernel(q_ref, kv_ref, x_ref, gamma_ref, out_ref,
                            m_sc, l_sc, acc_sc):
    # q_ref  : (1, Cq, tq)    bf16  query projection tile (channels on sublanes)
    # kv_ref : (1, C+Cq, tkv) bf16  rows [0:C]=value, [C:]=key
    # x_ref  : (1, C, tq)     f32   residual
    # gamma_ref: (1, 1) f32
    # out_ref: (1, C, tq) f32
    # scratch: m_sc/l_sc (1, tq) f32, acc_sc (C, tq) f32
    ki = pl.program_id(2)

    @pl.when(ki == 0)
    def _init():
        m_sc[...] = jnp.full(m_sc.shape, -jnp.inf, jnp.float32)
        l_sc[...] = jnp.zeros(l_sc.shape, jnp.float32)
        acc_sc[...] = jnp.zeros(acc_sc.shape, jnp.float32)

    C = acc_sc.shape[0]
    kv = kv_ref[0]                   # (C+Cq, tkv) bf16
    vT = kv[:C]                      # (C,  tkv)  value, channels-major
    kT = kv[C:]                      # (Cq, tkv)  key,   channels-major
    qT = q_ref[0]                    # (Cq, tq)

    # energy^T[j, i] = <k_j, q_i> -> (tkv, tq); softmax runs over j (sublanes).
    e_t = jax.lax.dot_general(kT, qT, (((0,), (0,)), ((), ())),
                              preferred_element_type=jnp.float32)

    # Online softmax update (all state in f32).
    m_prev = m_sc[...]                                            # (1, tq)
    m_new = jnp.maximum(m_prev, jnp.max(e_t, axis=0, keepdims=True))
    p = jnp.exp(e_t - m_new)                                      # (tkv, tq) f32
    alpha = jnp.exp(m_prev - m_new)                               # (1, tq)
    l_sc[...] = alpha * l_sc[...] + jnp.sum(p, axis=0, keepdims=True)
    acc_sc[...] = alpha * acc_sc[...] + jnp.dot(
        vT, p.astype(jnp.bfloat16), preferred_element_type=jnp.float32)  # (C, tq)
    m_sc[...] = m_new

    @pl.when(ki == pl.num_programs(2) - 1)
    def _finalize():
        inv_l = pl.reciprocal(l_sc[...], approx=True)             # EUP slot, ~free
        out_ref[0] = gamma_ref[...] * (acc_sc[...] * inv_l) + x_ref[0]


# ------------------------------- wrapper ------------------------------------
def _largest_tile(n, cap):
    for t in (1024, 512, 256, 128):
        if t <= cap and n % t == 0:
            return t
    return n  # N not a multiple of 128: single full-extent tile fallback


def _pick_tiles(batch, n):
    if n % 128 != 0:
        # TODO(synk): pad N up to a multiple of 128 and mask the kv tail so stores
        # stay lane-dense instead of this full-extent fallback.
        return n, n
    # Large tq amortizes the per-q-tile init and keeps output stores lane-dense;
    # modest tkv caps the (tkv, tq) score-tile vreg/VMEM pressure.
    tq = _largest_tile(n, 1024)
    # v7x megacore: make sure there are >= 2 parallel grid blocks.
    if batch * (n // tq) < 2 and (n // 2) % 128 == 0:
        tq = n // 2
    tkv = _largest_tile(n, 256)
    return tq, tkv


def self_attention_pallas(x, Wq, bq, Wk, bk, Wv, bv, gamma, *, tq=None, tkv=None):
    """x: (B, C, W, H) float32. Conv weights in PyTorch OIHW layout (Cout, C, 3, 3)."""
    B, C, W, H = x.shape
    N = W * H
    Cq = Wq.shape[0]
    C9 = C * 9
    Ckv = C + Cq

    # ---- pass 1: reflect pad + im2col (once per image) + q/k/v projections ----
    xp = jnp.pad(x, ((0, 0), (0, 0), (1, 1), (1, 1)), mode="reflect")
    # patches[b, ci*9 + ki*3 + kj, w*H + h] = xp[b, ci, w+ki, h+kj]; N on lanes.
    # TODO(synk): synthesize the 9 taps inside the projection kernel from the
    # reflect-padded input (shifted slices) to avoid materializing the 9x im2col
    # array in HBM at all.
    taps = [xp[:, :, ki:ki + W, kj:kj + H] for ki in range(3) for kj in range(3)]
    patches = jnp.stack(taps, axis=2).reshape(B, C9, N).astype(jnp.bfloat16)

    # Flattened conv weights (bf16: MXU truncates to bf16 anyway); value rows first
    # in the fused K|V weight so the in-kernel split lands on row C.
    wq = Wq.reshape(Cq, C9).astype(jnp.bfloat16)
    wkv = jnp.concatenate([Wv.reshape(C, C9), Wk.reshape(Cq, C9)],
                          axis=0).astype(jnp.bfloat16)
    bq2 = bq.reshape(Cq, 1).astype(jnp.float32)
    bkv = jnp.concatenate([bv, bk]).reshape(Ckv, 1).astype(jnp.float32)

    tn = _largest_tile(N, 512)
    q_all, kv_all = pl.pallas_call(
        _qkv_proj_kernel,
        out_shape=(jax.ShapeDtypeStruct((B, Cq, N), jnp.bfloat16),
                   jax.ShapeDtypeStruct((B, Ckv, N), jnp.bfloat16)),
        grid=(B, N // tn),
        in_specs=[
            pl.BlockSpec((1, C9, tn), lambda b, n: (b, 0, n)),   # patches
            pl.BlockSpec((Cq, C9),    lambda b, n: (0, 0)),      # Wq
            pl.BlockSpec((Cq, 1),     lambda b, n: (0, 0)),      # bq
            pl.BlockSpec((Ckv, C9),   lambda b, n: (0, 0)),      # Wv|Wk fused
            pl.BlockSpec((Ckv, 1),    lambda b, n: (0, 0)),      # bv|bk fused
        ],
        out_specs=(pl.BlockSpec((1, Cq, tn),  lambda b, n: (b, 0, n)),
                   pl.BlockSpec((1, Ckv, tn), lambda b, n: (b, 0, n))),
        compiler_params=pltpu.CompilerParams(
            dimension_semantics=("parallel", "parallel")),
    )(patches, wq, bq2, wkv, bkv)

    # ---- pass 2: flash-style tiled attention + residual ----
    tq_d, tkv_d = _pick_tiles(B, N)
    if tq is None:
        tq = tq_d
    if tkv is None:
        tkv = tkv_d
    assert N % tq == 0 and N % tkv == 0

    xcn = x.reshape(B, C, N)
    gamma2 = gamma.reshape(1, 1).astype(jnp.float32)
    grid = (B, N // tq, N // tkv)

    # NOTE: once the kv stream is this small, pipeline_mode=pl.Buffered(3) on the
    # kv BlockSpec (or a larger tkv) can hide per-step DMA issue overhead.
    out_cn = pl.pallas_call(
        _flash_attention_kernel,
        out_shape=jax.ShapeDtypeStruct((B, C, N), jnp.float32),
        grid=grid,
        in_specs=[
            pl.BlockSpec((1, Cq, tq),   lambda b, qi, ki: (b, 0, qi)),  # q tile
            pl.BlockSpec((1, Ckv, tkv), lambda b, qi, ki: (b, 0, ki)),  # v|k tile
            pl.BlockSpec((1, C, tq),    lambda b, qi, ki: (b, 0, qi)),  # residual x
            pl.BlockSpec((1, 1),        lambda b, qi, ki: (0, 0)),      # gamma
        ],
        out_specs=pl.BlockSpec((1, C, tq), lambda b, qi, ki: (b, 0, qi)),
        scratch_shapes=[
            pltpu.VMEM((1, tq), jnp.float32),   # running max (m)
            pltpu.VMEM((1, tq), jnp.float32),   # running sum (l)
            pltpu.VMEM((C, tq), jnp.float32),   # output accumulator
        ],
        compiler_params=pltpu.CompilerParams(
            dimension_semantics=("parallel", "parallel", "arbitrary"),
            vmem_limit_bytes=48 * 1024 * 1024,   # headroom under v7x 64 MiB VMEM
        ),
    )(q_all, kv_all, xcn, gamma2)

    return out_cn.reshape(B, C, W, H)


# ---------------- pure-JAX reference (independent conv path) ----------------
_HP = jax.lax.Precision.HIGHEST


def _conv2d_reflect_ref(x, w, b):
    xp = jnp.pad(x, ((0, 0), (0, 0), (1, 1), (1, 1)), mode="reflect")
    y = jax.lax.conv_general_dilated(
        xp, w, window_strides=(1, 1), padding="VALID",
        dimension_numbers=("NCHW", "OIHW", "NCHW"), precision=_HP)
    return y + b[None, :, None, None]


def self_attention_ref(x, Wq, bq, Wk, bk, Wv, bv, gamma):
    B, C, W, H = x.shape
    N = W * H
    q = _conv2d_reflect_ref(x, Wq, bq).reshape(B, -1, N).transpose(0, 2, 1)  # (B,N,Cq)
    k = _conv2d_reflect_ref(x, Wk, bk).reshape(B, -1, N)                     # (B,Cq,N)
    v = _conv2d_reflect_ref(x, Wv, bv).reshape(B, -1, N)                     # (B,C,N)
    energy = jnp.einsum("bnc,bcm->bnm", q, k, precision=_HP)                 # (B,N,N)
    attn = jax.nn.softmax(energy, axis=-1)
    out = jnp.einsum("bcj,bij->bci", v, attn, precision=_HP)                 # (B,C,N)
    out = out.reshape(B, C, W, H)
    return gamma.reshape(()) * out + x


if __name__ == "__main__":
    B, C, W, H = 2, 16, 16, 16        # in_dim = 16 -> query/key channels = 2, N = 256
    Cq = C // 8

    key = jax.random.PRNGKey(0)
    ks = jax.random.split(key, 8)
    Wq = 0.1 * jax.random.normal(ks[0], (Cq, C, 3, 3), jnp.float32)
    bq = 0.1 * jax.random.normal(ks[1], (Cq,), jnp.float32)
    Wk = 0.1 * jax.random.normal(ks[2], (Cq, C, 3, 3), jnp.float32)
    bk = 0.1 * jax.random.normal(ks[3], (Cq,), jnp.float32)
    Wv = 0.1 * jax.random.normal(ks[4], (C, C, 3, 3), jnp.float32)
    bv = 0.1 * jax.random.normal(ks[5], (C,), jnp.float32)
    # PyTorch initializes gamma to 0 (output == x); use a nonzero value so the
    # attention path is actually exercised.
    gamma = jnp.array([0.5], dtype=jnp.float32)
    x = jax.random.normal(ks[6], (B, C, W, H), jnp.float32)

    ref = self_attention_ref(x, Wq, bq, Wk, bk, Wv, bv, gamma)

    # 1) default tiling (tq = tkv = 256 at N = 256)
    out1 = jax.jit(self_attention_pallas)(x, Wq, bq, Wk, bk, Wv, bv, gamma)
    out1 = jax.block_until_ready(out1)
    np.testing.assert_allclose(np.asarray(out1), np.asarray(ref), rtol=5e-2, atol=5e-2)

    # 2) forced flash-tiled path (2 q tiles x 2 kv tiles -> exercises the online
    #    softmax init/accumulate/finalize logic)
    fn = jax.jit(functools.partial(self_attention_pallas, tq=128, tkv=128))
    out2 = jax.block_until_ready(fn(x, Wq, bq, Wk, bk, Wv, bv, gamma))
    np.testing.assert_allclose(np.asarray(out2), np.asarray(ref), rtol=5e-2, atol=5e-2)

    print("KERNEL_OK")
</pallas_src>

<mosaic_0001>
module attributes {stable_mosaic.version = 11 : i64} {
  func.func @_qkv_proj_kernel(%arg0: i32, %arg1: i32, %arg2: memref<1x144x256xbf16, #tpu.memory_space<vmem>>, %arg3: memref<2x144xbf16, #tpu.memory_space<vmem>>, %arg4: memref<2x1xf32, #tpu.memory_space<vmem>>, %arg5: memref<18x144xbf16, #tpu.memory_space<vmem>>, %arg6: memref<18x1xf32, #tpu.memory_space<vmem>>, %arg7: memref<1x2x256xbf16, #tpu.memory_space<vmem>>, %arg8: memref<1x18x256xbf16, #tpu.memory_space<vmem>>) attributes {dimension_semantics = [#tpu.dimension_semantics<parallel>, #tpu.dimension_semantics<parallel>], iteration_bounds = array<i64: 2, 1>, scalar_prefetch = 0 : i64, scratch_operands = 0 : i64, tpu.core_type = #tpu.core_type<tc>, window_params = [{transform_indices = @transform_0, window_bounds = array<i64: 1, 144, 256>}, {pipeline_mode = #tpu.pipeline_mode<synchronous>, transform_indices = @transform_1, window_bounds = array<i64: 2, 144>}, {pipeline_mode = #tpu.pipeline_mode<synchronous>, transform_indices = @transform_2, window_bounds = array<i64: 2, 1>}, {pipeline_mode = #tpu.pipeline_mode<synchronous>, transform_indices = @transform_3, window_bounds = array<i64: 18, 144>}, {pipeline_mode = #tpu.pipeline_mode<synchronous>, transform_indices = @transform_4, window_bounds = array<i64: 18, 1>}, {transform_indices = @transform_5, window_bounds = array<i64: 1, 2, 256>}, {transform_indices = @transform_6, window_bounds = array<i64: 1, 18, 256>}]} {
    %c0 = arith.constant 0 : index
    %c0_0 = arith.constant 0 : index
    %c0_1 = arith.constant 0 : index
    %0 = vector.load %arg2[%c0, %c0_0, %c0_1] : memref<1x144x256xbf16, #tpu.memory_space<vmem>>, vector<1x144x256xbf16>
    %1 = vector.shape_cast %0 : vector<1x144x256xbf16> to vector<144x256xbf16>
    %c0_2 = arith.constant 0 : index
    %c0_3 = arith.constant 0 : index
    %2 = vector.load %arg3[%c0_2, %c0_3] : memref<2x144xbf16, #tpu.memory_space<vmem>>, vector<2x144xbf16>
    %cst = arith.constant dense<0.000000e+00> : vector<2x256xf32>
    %3 = tpu.matmul %2, %1, %cst {dimension_numbers = #tpu.dot_dimension_numbers<[1], [0], [0], [1], [0, 0, 1, 1], [], []>} : vector<2x144xbf16>, vector<144x256xbf16>, vector<2x256xf32> -> vector<2x256xf32>
    %c0_4 = arith.constant 0 : index
    %c0_5 = arith.constant 0 : index
    %4 = vector.load %arg4[%c0_4, %c0_5] : memref<2x1xf32, #tpu.memory_space<vmem>>, vector<2x1xf32>
    %5 = vector.broadcast %4 : vector<2x1xf32> to vector<2x256xf32>
    %6 = arith.addf %3, %5 : vector<2x256xf32>
    %7 = arith.truncf %6 : vector<2x256xf32> to vector<2x256xbf16>
    %c0_6 = arith.constant 0 : index
    %c0_7 = arith.constant 0 : index
    %c0_8 = arith.constant 0 : index
    %8 = vector.load %arg7[%c0_6, %c0_7, %c0_8] : memref<1x2x256xbf16, #tpu.memory_space<vmem>>, vector<1x2x256xbf16>
    %9 = vector.shape_cast %8 : vector<1x2x256xbf16> to vector<2x256xbf16>
    %10 = vector.shape_cast %7 : vector<2x256xbf16> to vector<1x2x256xbf16>
    tpu.vector_store %arg7[%c0_6, %c0_7, %c0_8], %10 {strides = array<i32>} : memref<1x2x256xbf16, #tpu.memory_space<vmem>>, vector<1x2x256xbf16>,
    %c0_9 = arith.constant 0 : index
    %c0_10 = arith.constant 0 : index
    %11 = vector.load %arg5[%c0_9, %c0_10] : memref<18x144xbf16, #tpu.memory_space<vmem>>, vector<18x144xbf16>
    %cst_11 = arith.constant dense<0.000000e+00> : vector<18x256xf32>
    %12 = tpu.matmul %11, %1, %cst_11 {dimension_numbers = #tpu.dot_dimension_numbers<[1], [0], [0], [1], [0, 0, 1, 1], [], []>} : vector<18x144xbf16>, vector<144x256xbf16>, vector<18x256xf32> -> vector<18x256xf32>
    %c0_12 = arith.constant 0 : index
    %c0_13 = arith.constant 0 : index
    %13 = vector.load %arg6[%c0_12, %c0_13] : memref<18x1xf32, #tpu.memory_space<vmem>>, vector<18x1xf32>
    %14 = vector.broadcast %13 : vector<18x1xf32> to vector<18x256xf32>
    %15 = arith.addf %12, %14 : vector<18x256xf32>
    %16 = arith.truncf %15 : vector<18x256xf32> to vector<18x256xbf16>
    %c0_14 = arith.constant 0 : index
    %c0_15 = arith.constant 0 : index
    %c0_16 = arith.constant 0 : index
    %17 = vector.load %arg8[%c0_14, %c0_15, %c0_16] : memref<1x18x256xbf16, #tpu.memory_space<vmem>>, vector<1x18x256xbf16>
    %18 = vector.shape_cast %17 : vector<1x18x256xbf16> to vector<18x256xbf16>
    %19 = vector.shape_cast %16 : vector<18x256xbf16> to vector<1x18x256xbf16>
    tpu.vector_store %arg8[%c0_14, %c0_15, %c0_16], %19 {strides = array<i32>} : memref<1x18x256xbf16, #tpu.memory_space<vmem>>, vector<1x18x256xbf16>,
    return
  }
  func.func @transform_0(%arg0: i32, %arg1: i32) -> (i32, i32, i32) {
    %c0_i32 = arith.constant 0 : i32
    %c0_i32_0 = arith.constant 0 : i32
    return %arg0, %c0_i32, %arg1 : i32, i32, i32
  }
  func.func @transform_1(%arg0: i32, %arg1: i32) -> (i32, i32) {
    %c0_i32 = arith.constant 0 : i32
    %c0_i32_0 = arith.constant 0 : i32
    %c0_i32_1 = arith.constant 0 : i32
    return %c0_i32, %c0_i32_0 : i32, i32
  }
  func.func @transform_2(%arg0: i32, %arg1: i32) -> (i32, i32) {
    %c0_i32 = arith.constant 0 : i32
    %c0_i32_0 = arith.constant 0 : i32
    %c0_i32_1 = arith.constant 0 : i32
    return %c0_i32, %c0_i32_0 : i32, i32
  }
  func.func @transform_3(%arg0: i32, %arg1: i32) -> (i32, i32) {
    %c0_i32 = arith.constant 0 : i32
    %c0_i32_0 = arith.constant 0 : i32
    %c0_i32_1 = arith.constant 0 : i32
    return %c0_i32, %c0_i32_0 : i32, i32
  }
  func.func @transform_4(%arg0: i32, %arg1: i32) -> (i32, i32) {
    %c0_i32 = arith.constant 0 : i32
    %c0_i32_0 = arith.constant 0 : i32
    %c0_i32_1 = arith.constant 0 : i32
    return %c0_i32, %c0_i32_0 : i32, i32
  }
  func.func @transform_5(%arg0: i32, %arg1: i32) -> (i32, i32, i32) {
    %c0_i32 = arith.constant 0 : i32
    %c0_i32_0 = arith.constant 0 : i32
    return %arg0, %c0_i32, %arg1 : i32, i32, i32
  }
  func.func @transform_6(%arg0: i32, %arg1: i32) -> (i32, i32, i32) {
    %c0_i32 = arith.constant 0 : i32
    %c0_i32_0 = arith.constant 0 : i32
    return %arg0, %c0_i32, %arg1 : i32, i32, i32
  }
}

module attributes {stable_mosaic.version = 11 : i64} {
  func.func @_flash_attention_kernel(%arg0: i32, %arg1: i32, %arg2: i32, %arg3: memref<1x2x256xbf16, #tpu.memory_space<vmem>>, %arg4: memref<1x18x256xbf16, #tpu.memory_space<vmem>>, %arg5: memref<1x16x256xf32, #tpu.memory_space<vmem>>, %arg6: memref<1x1xf32, #tpu.memory_space<vmem>>, %arg7: memref<1x16x256xf32, #tpu.memory_space<vmem>>, %arg8: memref<1x256xf32, #tpu.memory_space<vmem>>, %arg9: memref<1x256xf32, #tpu.memory_space<vmem>>, %arg10: memref<16x256xf32, #tpu.memory_space<vmem>>) attributes {dimension_semantics = [#tpu.dimension_semantics<parallel>, #tpu.dimension_semantics<parallel>, #tpu.dimension_semantics<arbitrary>], iteration_bounds = array<i64: 2, 1, 1>, scalar_prefetch = 0 : i64, scratch_operands = 3 : i64, tpu.core_type = #tpu.core_type<tc>, window_params = [{transform_indices = @transform_0, window_bounds = array<i64: 1, 2, 256>}, {transform_indices = @transform_1, window_bounds = array<i64: 1, 18, 256>}, {transform_indices = @transform_2, window_bounds = array<i64: 1, 16, 256>}, {pipeline_mode = #tpu.pipeline_mode<synchronous>, transform_indices = @transform_3, window_bounds = array<i64: 1, 1>}, {transform_indices = @transform_4, window_bounds = array<i64: 1, 16, 256>}]} {
    %c0_i32 = arith.constant 0 : i32
    %0 = arith.cmpi eq, %arg2, %c0_i32 : i32
    %1 = arith.extui %0 : i1 to i32
    %c0_i32_0 = arith.constant 0 : i32
    %2 = arith.cmpi ne, %1, %c0_i32_0 : i32
    scf.if %2 {
      %cst_23 = arith.constant 0xFF800000 : f32
      %36 = vector.broadcast %cst_23 : f32 to vector<1x256xf32>
      %c0_24 = arith.constant 0 : index
      %c0_25 = arith.constant 0 : index
      %37 = vector.load %arg8[%c0_24, %c0_25] : memref<1x256xf32, #tpu.memory_space<vmem>>, vector<1x256xf32>
      tpu.vector_store %arg8[%c0_24, %c0_25], %36 {strides = array<i32>} : memref<1x256xf32, #tpu.memory_space<vmem>>, vector<1x256xf32>,
      %cst_26 = arith.constant 0.000000e+00 : f32
      %38 = vector.broadcast %cst_26 : f32 to vector<1x256xf32>
      %c0_27 = arith.constant 0 : index
      %c0_28 = arith.constant 0 : index
      %39 = vector.load %arg9[%c0_27, %c0_28] : memref<1x256xf32, #tpu.memory_space<vmem>>, vector<1x256xf32>
      tpu.vector_store %arg9[%c0_27, %c0_28], %38 {strides = array<i32>} : memref<1x256xf32, #tpu.memory_space<vmem>>, vector<1x256xf32>,
      %cst_29 = arith.constant 0.000000e+00 : f32
      %40 = vector.broadcast %cst_29 : f32 to vector<16x256xf32>
      %c0_30 = arith.constant 0 : index
      %c0_31 = arith.constant 0 : index
      %41 = vector.load %arg10[%c0_30, %c0_31] : memref<16x256xf32, #tpu.memory_space<vmem>>, vector<16x256xf32>
      tpu.vector_store %arg10[%c0_30, %c0_31], %40 {strides = array<i32>} : memref<16x256xf32, #tpu.memory_space<vmem>>, vector<16x256xf32>,
    } else {
    }
    %c0 = arith.constant 0 : index
    %c0_1 = arith.constant 0 : index
    %c0_2 = arith.constant 0 : index
    %3 = vector.load %arg4[%c0, %c0_1, %c0_2] : memref<1x18x256xbf16, #tpu.memory_space<vmem>>, vector<1x18x256xbf16>
    %4 = vector.shape_cast %3 : vector<1x18x256xbf16> to vector<18x256xbf16>
    %5 = vector.extract_strided_slice %4 {offsets = [0, 0], sizes = [16, 256], strides = [1, 1]} : vector<18x256xbf16> to vector<16x256xbf16>
    %6 = vector.extract_strided_slice %4 {offsets = [16, 0], sizes = [2, 256], strides = [1, 1]} : vector<18x256xbf16> to vector<2x256xbf16>
    %c0_3 = arith.constant 0 : index
    %c0_4 = arith.constant 0 : index
    %c0_5 = arith.constant 0 : index
    %7 = vector.load %arg3[%c0_3, %c0_4, %c0_5] : memref<1x2x256xbf16, #tpu.memory_space<vmem>>, vector<1x2x256xbf16>
    %8 = vector.shape_cast %7 : vector<1x2x256xbf16> to vector<2x256xbf16>
    %cst = arith.constant dense<0.000000e+00> : vector<256x256xf32>
    %9 = tpu.matmul %6, %8, %cst {dimension_numbers = #tpu.dot_dimension_numbers<[0], [0], [1], [1], [0, 1, 1, 1], [], []>} : vector<2x256xbf16>, vector<2x256xbf16>, vector<256x256xf32> -> vector<256x256xf32>
    %c0_6 = arith.constant 0 : index
    %c0_7 = arith.constant 0 : index
    %10 = vector.load %arg8[%c0_6, %c0_7] : memref<1x256xf32, #tpu.memory_space<vmem>>, vector<1x256xf32>
    %cst_8 = arith.constant dense<0xFF800000> : vector<256xf32>
    %11 = vector.multi_reduction <maximumf>, %9, %cst_8 [0] : vector<256x256xf32> to vector<256xf32>
    %12 = vector.shape_cast %11 : vector<256xf32> to vector<1x256xf32>
    %13 = arith.maximumf %10, %12 : vector<1x256xf32>
    %14 = vector.broadcast %13 : vector<1x256xf32> to vector<256x256xf32>
    %15 = arith.subf %9, %14 : vector<256x256xf32>
    %16 = math.exp %15 : vector<256x256xf32>
    %17 = arith.subf %10, %13 : vector<1x256xf32>
    %18 = math.exp %17 : vector<1x256xf32>
    %c0_9 = arith.constant 0 : index
    %c0_10 = arith.constant 0 : index
    %19 = vector.load %arg9[%c0_9, %c0_10] : memref<1x256xf32, #tpu.memory_space<vmem>>, vector<1x256xf32>
    %20 = arith.mulf %18, %19 : vector<1x256xf32>
    %cst_11 = arith.constant dense<0.000000e+00> : vector<256xf32>
    %21 = vector.multi_reduction <add>, %16, %cst_11 [0] : vector<256x256xf32> to vector<256xf32>
    %22 = vector.shape_cast %21 : vector<256xf32> to vector<1x256xf32>
    %23 = arith.addf %20, %22 : vector<1x256xf32>
    %c0_12 = arith.constant 0 : index
    %c0_13 = arith.constant 0 : index
    %24 = vector.load %arg9[%c0_12, %c0_13] : memref<1x256xf32, #tpu.memory_space<vmem>>, vector<1x256xf32>
    tpu.vector_store %arg9[%c0_12, %c0_13], %23 {strides = array<i32>} : memref<1x256xf32, #tpu.memory_space<vmem>>, vector<1x256xf32>,
    %c0_14 = arith.constant 0 : index
    %c0_15 = arith.constant 0 : index
    %25 = vector.load %arg10[%c0_14, %c0_15] : memref<16x256xf32, #tpu.memory_space<vmem>>, vector<16x256xf32>
    %26 = vector.broadcast %18 : vector<1x256xf32> to vector<16x256xf32>
    %27 = arith.mulf %26, %25 : vector<16x256xf32>
    %28 = arith.truncf %16 : vector<256x256xf32> to vector<256x256xbf16>
    %cst_16 = arith.constant dense<0.000000e+00> : vector<16x256xf32>
    %29 = tpu.matmul %5, %28, %cst_16 {dimension_numbers = #tpu.dot_dimension_numbers<[1], [0], [0], [1], [0, 0, 1, 1], [], []>} : vector<16x256xbf16>, vector<256x256xbf16>, vector<16x256xf32> -> vector<16x256xf32>
    %30 = arith.addf %27, %29 : vector<16x256xf32>
    %c0_17 = arith.constant 0 : index
    %c0_18 = arith.constant 0 : index
    %31 = vector.load %arg10[%c0_17, %c0_18] : memref<16x256xf32, #tpu.memory_space<vmem>>, vector<16x256xf32>
    tpu.vector_store %arg10[%c0_17, %c0_18], %30 {strides = array<i32>} : memref<16x256xf32, #tpu.memory_space<vmem>>, vector<16x256xf32>,
    %c0_19 = arith.constant 0 : index
    %c0_20 = arith.constant 0 : index
    %32 = vector.load %arg8[%c0_19, %c0_20] : memref<1x256xf32, #tpu.memory_space<vmem>>, vector<1x256xf32>
    tpu.vector_store %arg8[%c0_19, %c0_20], %13 {strides = array<i32>} : memref<1x256xf32, #tpu.memory_space<vmem>>, vector<1x256xf32>,
    %c0_i32_21 = arith.constant 0 : i32
    %33 = arith.cmpi eq, %arg2, %c0_i32_21 : i32
    %34 = arith.extui %33 : i1 to i32
    %c0_i32_22 = arith.constant 0 : i32
    %35 = arith.cmpi ne, %34, %c0_i32_22 : i32
    scf.if %35 {
      %c0_23 = arith.constant 0 : index
      %c0_24 = arith.constant 0 : index
      %36 = vector.load %arg9[%c0_23, %c0_24] : memref<1x256xf32, #tpu.memory_space<vmem>>, vector<1x256xf32>
      %37 = tpu.reciprocal %36 {approx = true} : vector<1x256xf32> -> vector<1x256xf32>
      %c0_25 = arith.constant 0 : index
      %c0_26 = arith.constant 0 : index
      %38 = vector.load %arg6[%c0_25, %c0_26] : memref<1x1xf32, #tpu.memory_space<vmem>>, vector<1x1xf32>
      %c0_27 = arith.constant 0 : index
      %c0_28 = arith.constant 0 : index
      %39 = vector.load %arg10[%c0_27, %c0_28] : memref<16x256xf32, #tpu.memory_space<vmem>>, vector<16x256xf32>
      %40 = vector.broadcast %37 : vector<1x256xf32> to vector<16x256xf32>
      %41 = arith.mulf %39, %40 : vector<16x256xf32>
      %42 = vector.broadcast %38 : vector<1x1xf32> to vector<16x256xf32>
      %43 = arith.mulf %42, %41 : vector<16x256xf32>
      %c0_29 = arith.constant 0 : index
      %c0_30 = arith.constant 0 : index
      %c0_31 = arith.constant 0 : index
      %44 = vector.load %arg5[%c0_29, %c0_30, %c0_31] : memref<1x16x256xf32, #tpu.memory_space<vmem>>, vector<1x16x256xf32>
      %45 = vector.shape_cast %44 : vector<1x16x256xf32> to vector<16x256xf32>
      %46 = arith.addf %43, %45 : vector<16x256xf32>
      %c0_32 = arith.constant 0 : index
      %c0_33 = arith.constant 0 : index
      %c0_34 = arith.constant 0 : index
      %47 = vector.load %arg7[%c0_32, %c0_33, %c0_34] : memref<1x16x256xf32, #tpu.memory_space<vmem>>, vector<1x16x256xf32>
      %48 = vector.shape_cast %47 : vector<1x16x256xf32> to vector<16x256xf32>
      %49 = vector.shape_cast %46 : vector<16x256xf32> to vector<1x16x256xf32>
      tpu.vector_store %arg7[%c0_32, %c0_33, %c0_34], %49 {strides = array<i32>} : memref<1x16x256xf32, #tpu.memory_space<vmem>>, vector<1x16x256xf32>,
    } else {
    }
    return
  }
  func.func @transform_0(%arg0: i32, %arg1: i32, %arg2: i32) -> (i32, i32, i32) {
    %c0_i32 = arith.constant 0 : i32
    %c0_i32_0 = arith.constant 0 : i32
    return %arg0, %c0_i32, %arg1 : i32, i32, i32
  }
  func.func @transform_1(%arg0: i32, %arg1: i32, %arg2: i32) -> (i32, i32, i32) {
    %c0_i32 = arith.constant 0 : i32
    %c0_i32_0 = arith.constant 0 : i32
    return %arg0, %c0_i32, %arg2 : i32, i32, i32
  }
  func.func @transform_2(%arg0: i32, %arg1: i32, %arg2: i32) -> (i32, i32, i32) {
    %c0_i32 = arith.constant 0 : i32
    %c0_i32_0 = arith.constant 0 : i32
    return %arg0, %c0_i32, %arg1 : i32, i32, i32
  }
  func.func @transform_3(%arg0: i32, %arg1: i32, %arg2: i32) -> (i32, i32) {
    %c0_i32 = arith.constant 0 : i32
    %c0_i32_0 = arith.constant 0 : i32
    %c0_i32_1 = arith.constant 0 : i32
    return %c0_i32, %c0_i32_0 : i32, i32
  }
  func.func @transform_4(%arg0: i32, %arg1: i32, %arg2: i32) -> (i32, i32, i32) {
    %c0_i32 = arith.constant 0 : i32
    %c0_i32_0 = arith.constant 0 : i32
    return %arg0, %c0_i32, %arg1 : i32, i32, i32
  }
}

</mosaic_0001>

<bundles_post_ra>
// kernel: self_attention_pallas.2
= control target key start
LH: loop header
LB: loop body
LE: loop exit
PB: predicated region body
PF: predicated region fallthrough
CT: control target
= control target key end

     0   :  { %s933_s21 = smov 0   ;;  %s935_s22 = smov 0   ;;  %s1031_s0 = inlined_call_operand.vmem [shape: bf16[2,144,256], index: 0, kind: input, shape index: {}]   ;;  %s1032_s1 = inlined_call_operand.vmem [shape: bf16[2,144], index: 1, kind: input, shape index: {}]   ;;  %s1033_s2 = inlined_call_operand.vmem [shape: f32[2,1], index: 2, kind: input, shape index: {}]   ;;  %s1034_s3 = inlined_call_operand.vmem [shape: bf16[18,144], index: 3, kind: input, shape index: {}]   ;;  %s1035_s4 = inlined_call_operand.vmem [shape: f32[18,1], index: 4, kind: input, shape index: {}]   ;;  %s1036_s5 = inlined_call_operand.vmem [shape: bf16[2,2,256], index: 5, kind: output, shape index: {0}]   ;;  %s1037_s6 = inlined_call_operand.vmem [shape: bf16[2,18,256], index: 6, kind: output, shape index: {1}]  }
   0x1   :  { %s937_s23 = smov 0  }
   0x2 LB: > { %s29_s24 = sadd.s32 1, %s890_s22  ;;  %p770_p0 = scmp.ge.s32.totalorder %s894_s23, 1  ;;  %s894_s23 = sphi %s937_s23, %s17_s23   ;;  %s890_s22 = sphi %s935_s22, %s1039_s22   ;;  %s886_s21 = sphi %s933_s21, %s1038_s21  }
   0x3   : > { %p31_p1 = scmp.ge.s32.totalorder %s29_s24, 2  ;;  %p238_p2 = scmp.lt.s32.totalorder %s894_s23, 3 }
   0x5   : > { %s1041_s24 = smov (%p31_p1, %s29_s24), 0  ;;  %p239_p3 = pnand %p770_p0, %p238_p2 }
   0x6   : > { %p285_p4 = scmp.lt.s32.totalorder (!%p239_p3), %s886_s21, 1 }
   0x7   : > { %242 = sbr.rel (%p239_p3) target bundleno = 262 (0x106), region = 40 }
   0xc   : > { %v954_v0 = vld.sshfl [vmem:[%s1032_s1] sm:$0x11 pattern:$0x75316420]  ;;  %v351_v1 = vlaneseq  ;;  %vm453_vm0 = vcmask 130048   ;;  %s1043_s21 = smov (!%p285_p4, %s886_s21), 1 }
   0xd   : > { %v896_v2 = vmov 1966171168   ;;  %v869_v5 = vld [vmem:[%s1034_s3 + $0x4] ss:$8 sps:$4 sm:$0xff]   ;;  %v333_v6 = vld [vmem:[%s1033_s2] sm:$0x3]  ;;  %v347_v8 = vcombine.high %v954_v0, %v954_v0 }
   0xe   : > { %v349_v3 = vunpack.c.l.s4 %v896_v2  ;;  %v352_v4 = vshrl.u32 %v351_v1, 7  ;;  %v523_v7 = vld [vmem:[%s1035_s4 + $0x8] sm:$0xff]  ;;  %s810_s9 = smul.u32 144, %s1043_s21  ;;  %800 = vmatprep.mubr.msk.bf16.mxu1 %vm453_vm0, %v869_v5  ;;  %v897_v10 = vmov 0   ;;  %v522_v16 = vld [vmem:[%s1035_s4] sm:$0xff]  ;;  %s772_s26 = sshll.u32 %s1043_s21, 1 }
   0xf   : > { %838 = vset.pattern.permute.xlu0 %v897_v10  ;;  %839 = vset.pattern.permute.xlu1 %v897_v10  ;;  %v524_v18 = vld [vmem:[%s1035_s4 + $0x10] sm:$0x3]  ;;  %v867_v34 = vld [vmem:[%s1034_s3] ss:$8 sps:$4 sm:$0xff]   ;;  %s811_s25 = smul.u32 24, %s1043_s21  ;;  %s301_s8 = scalar_lea.vmem %s1036_s5, %s772_s26 }
  0x10   : > { %v350_v9 = vunpack.c.0.s8 %v349_v3  ;;  %336 = vperm.xlu0 %838, %v333_v6   ;;  %s974_s12 = scalar_lea.vmem %s1031_s0, %s810_s9  ;;  %532 = vperm.xlu1 %839, %v523_v7   ;;  %v521_v33 = vld [vmem:[%s1034_s3 + $0x10] sm:$0x11] }
  0x11   : > { %v840_v12 = vld [vmem:[%s974_s12 + $0x74] ss:$8 sps:$4 sm:$0xff]   ;;  %v842_v13 = vld [vmem:[%s974_s12 + $0x70] ss:$8 sps:$4 sm:$0xff]   ;;  %v843_v15 = vld [vmem:[%s974_s12 + $0x64] ss:$8 sps:$4 sm:$0xff]   ;;  %v799_v36 = vcombine.high %v521_v33, %v521_v33  ;;  %v798_v37 = vcombine.low %v521_v33, %v521_v33  ;;  %s311_s29 = scalar_lea.vmem %s1037_s6, %s811_s25 }
  0x12   : > { %v976_v11 = vsub.s32 %v350_v9, %v352_v4  ;;  %457 = vmatprep.subr.bf16.mxu0 %v840_v12  ;;  %561 = vmatprep.subr.bf16.mxu1 %v840_v12  ;;  %v845_v17 = vld [vmem:[%s974_s12 + $0x60] ss:$8 sps:$4 sm:$0xff]   ;;  %v846_v19 = vld [vmem:[%s974_s12 + $0x54] ss:$8 sps:$4 sm:$0xff]   ;;  %v848_v20 = vld [vmem:[%s974_s12 + $0x50] ss:$8 sps:$4 sm:$0xff]  }
  0x13   : > { %458 = vmatpush1.bf16.msra.mxu0 %v842_v13  ;;  %562 = vmatpush1.bf16.msra.mxu1 %v842_v13  ;;  %v849_v21 = vld [vmem:[%s974_s12 + $0x44] ss:$8 sps:$4 sm:$0xff]   ;;  %v851_v22 = vld [vmem:[%s974_s12 + $0x40] ss:$8 sps:$4 sm:$0xff]   ;;  %v852_v23 = vld [vmem:[%s974_s12 + $0x34] ss:$8 sps:$4 sm:$0xff]  }
  0x14   : > { %v361_v14 = vrot.slane %v347_v8, %v976_v11  ;;  %459 = vmatprep.subr.bf16.mxu0 %v843_v15  ;;  %563 = vmatprep.subr.bf16.mxu1 %v843_v15  ;;  %v854_v24 = vld [vmem:[%s974_s12 + $0x30] ss:$8 sps:$4 sm:$0xff]   ;;  %v855_v25 = vld [vmem:[%s974_s12 + $0x24] ss:$8 sps:$4 sm:$0xff]   ;;  %v857_v26 = vld [vmem:[%s974_s12 + $0x20] ss:$8 sps:$4 sm:$0xff]   ;;  %v354_v35 = vrot.slane %v954_v0, %v976_v11 }
  0x15   : > { %527 = vperm.xlu0 %838, %v522_v16   ;;  %537 = vperm.xlu1 %839, %v524_v18   ;;  %v858_v27 = vld [vmem:[%s974_s12 + $0x14] ss:$8 sps:$4 sm:$0xff]   ;;  %v860_v28 = vld [vmem:[%s974_s12 + $0x10] ss:$8 sps:$4 sm:$0xff]   ;;  %v861_v29 = vld [vmem:[%s974_s12 + $0x4] ss:$8 sps:$4 sm:$0xff]  }
  0x16   : > { %793 = vmatprep.mubr.msk.bf16.mxu0 %vm453_vm0, %v361_v14  ;;  %v863_v30 = vld [vmem:[%s974_s12] ss:$8 sps:$4 sm:$0xff]   ;;  %v864_v31 = vld [vmem:[%s974_s12 + $0x84] ss:$8 sps:$4 sm:$0xff]  }
  0x17   : > { %460 = vmatpush1.bf16.msra.mxu0 %v845_v17  ;;  %564 = vmatpush1.bf16.msra.mxu1 %v845_v17  ;;  %v866_v32 = vld [vmem:[%s974_s12 + $0x80] ss:$8 sps:$4 sm:$0xff]  }
  0x18   : > { %461 = vmatprep.subr.bf16.mxu0 %v846_v19  ;;  %565 = vmatprep.subr.bf16.mxu1 %v846_v19 }
  0x1b   : > { %462 = vmatpush1.bf16.msra.mxu0 %v848_v20  ;;  %566 = vmatpush1.bf16.msra.mxu1 %v848_v20 }
  0x1c   : > { %463 = vmatprep.subr.bf16.mxu0 %v849_v21  ;;  %567 = vmatprep.subr.bf16.mxu1 %v849_v21 }
  0x1f   : > { %464 = vmatpush1.bf16.msra.mxu0 %v851_v22  ;;  %568 = vmatpush1.bf16.msra.mxu1 %v851_v22 }
  0x20   : > { %465 = vmatprep.subr.bf16.mxu0 %v852_v23  ;;  %569 = vmatprep.subr.bf16.mxu1 %v852_v23 }
  0x23   : > { %466 = vmatpush1.bf16.msra.mxu0 %v854_v24  ;;  %570 = vmatpush1.bf16.msra.mxu1 %v854_v24 }
  0x24   : > { %467 = vmatprep.subr.bf16.mxu0 %v855_v25  ;;  %571 = vmatprep.subr.bf16.mxu1 %v855_v25 }
  0x27   : > { %468 = vmatpush1.bf16.msra.mxu0 %v857_v26  ;;  %572 = vmatpush1.bf16.msra.mxu1 %v857_v26 }
  0x28   : > { %469 = vmatprep.subr.bf16.mxu0 %v858_v27  ;;  %573 = vmatprep.subr.bf16.mxu1 %v858_v27 }
  0x2b   : > { %470 = vmatpush1.bf16.msra.mxu0 %v860_v28  ;;  %574 = vmatpush1.bf16.msra.mxu1 %v860_v28 }
  0x2c   : > { %471 = vmatprep.subr.bf16.mxu0 %v861_v29  ;;  %575 = vmatprep.subr.bf16.mxu1 %v861_v29 }
  0x2f   : > { %472 = vmatpush1.bf16.msra.mxu0 %v863_v30  ;;  %576 = vmatpush1.bf16.msra.mxu1 %v863_v30 }
  0x30   : > { %487 = vmatprep.subr.bf16.mxu0 %v864_v31  ;;  %591 = vmatprep.subr.bf16.mxu1 %v864_v31 }
  0x33   : > { %488 = vmatpush2.bf16.msra.mxu0 %v866_v32  ;;  %592 = vmatpush2.bf16.msra.mxu1 %v866_v32 }
  0x36   : > { %490 = vmatmul.mubr.bf16.vlgmr.msra.gmra.mxu0 %v354_v35  ;;  %594 = vmatmul.mubr.bf16.vlgmr.msra.gmra.mxu1 %v867_v34 }
  0x37   : > { %801 = vmatprep.mubr.msk.bf16.mxu1 %vm453_vm0, %v799_v36 }
  0x3e   : > { %604 = vmatmul.mubr.bf16.gmra.mxu1 %v798_v37 }
  0x8b   : > { %v337_v38 = vpop.permute.xlu0 %336  ;;  %v533_v46 = vpop.permute.xlu1 %532 }
  0x90   : > { %v528_v39 = vpop.permute.xlu0 %527  ;;  %v538_v60 = vpop.permute.xlu1 %537 }
  0xf6   : > { %v491_v40 = vpop.f32.mrf.mxu0  ;;  %v595_v41 = vpop.f32.mrf.mxu1 }
  0xf7   : > { %v492_v42 = vadd.f32 %v491_v40, %v337_v38  ;;  %v596_v45 = vadd.f32 %v595_v41, %v528_v39 }
  0xf8   : > { %v493_v43 = vpop.f32.mrf.mxu0  ;;  %v597_v44 = vpop.f32.mrf.mxu1 }
  0xf9   : > { %v494_v47 = vadd.f32 %v493_v43, %v337_v38  ;;  %v598_v48 = vadd.f32 %v597_v44, %v528_v39 }
  0xfa   : > { %v495_v49 = vpop.f32.mrf.mxu0  ;;  %v599_v50 = vpop.f32.mrf.mxu1 }
  0xfb   : > { %v794_v51 = vpack.c.bf16 %v494_v47, %v492_v42  ;;  %v807_v52 = vpack.c.bf16 %v598_v48, %v596_v45  ;;  %v600_v56 = vadd.f32 %v599_v50, %v533_v46 }
  0xfc   : > { %v496_v53 = vpop.f32.mrf.mxu0  ;;  %v601_v54 = vpop.f32.mrf.mxu1 }
  0xfd   : > { %v509_v55 = vrot.slane %v794_v51, %v976_v11  ;;  %632 = vst [vmem:[%s311_s29] sm:$0xff] %v807_v52  ;;  %v602_v57 = vadd.f32 %v601_v54, %v533_v46 }
  0xfe   : > { %v605_v58 = vpop.f32.mrf.mxu1 }
  0xff   : > { %795 = vst.sshfl [vmem:[%s301_s8] sm:$0x5 pattern:$0x73625140] %v509_v55  ;;  %v808_v59 = vpack.c.bf16 %v602_v57, %v600_v56  ;;  %v606_v62 = vadd.f32 %v605_v58, %v538_v60 }
 0x100   : > { %v607_v61 = vpop.f32.mrf.mxu1 }
 0x101   : > { %633 = vst [vmem:[%s311_s29 + $0x8] sm:$0xff] %v808_v59  ;;  %v608_v63 = vadd.f32 %v607_v61, %v538_v60 }
 0x102   : > { %v609_v0 = vpop.f32.mrf.mxu1 }
 0x103   : > { %v809_v1 = vpack.c.bf16 %v608_v63, %v606_v62 }
 0x104   : > { %v610_v2 = vpop.f32.mrf.mxu1 }
 0x105   : > { %634 = vst [vmem:[%s311_s29 + $0x10] sm:$0x11] %v809_v1 }
 0x106 PF: > { %s17_s23 = sadd.s32 1, %s894_s23   ;;  %s1038_s21 = smov %s890_s22 }
 0x107   : > { %p14_p5 = scmp.ge.s32.totalorder %s17_s23, 4   ;;  %s1039_s22 = smov %s1041_s24 }
 0x109   :  { %16 = sbr.rel (!%p14_p5) target bundleno = 2 (0x2), region = 82 }

// kernel: self_attention_pallas.3
= control target key start
LH: loop header
LB: loop body
LE: loop exit
PB: predicated region body
PF: predicated region fallthrough
CT: control target
= control target key end

     0   :  { %s1593_s17 = smov 0   ;;  %s1595_s18 = smov 0   ;;  %s2330_s0 = inlined_call_operand.vmem [shape: bf16[2,2,256], index: 0, kind: input, shape index: {}]   ;;  %s2331_s1 = inlined_call_operand.vmem [shape: bf16[2,18,256], index: 1, kind: input, shape index: {}]   ;;  %s2332_s2 = inlined_call_operand.vmem [shape: f32[2,16,256], index: 2, kind: input, shape index: {}]   ;;  %s2333_s3 = inlined_call_operand.<no memory space> [shape: f32[1,1], index: 3, kind: input, shape index: {}]   ;;  %s2334_s4 = inlined_call_operand.vmem [shape: f32[2,16,256], index: 4, kind: output, shape index: {}]  }
   0x1   :  { %v9_v0 = vstv %s2333_s3  ;;  %s1597_s19 = smov 0  }
   0x2   :  { %10 = vst [vmem:[#allocation5] sm:$0x1] %v9_v0 }
   0x3 LB: > { %s35_s3 = sadd.s32 1, %s1555_s18  ;;  %p1335_p0 = scmp.ge.s32.totalorder %s1559_s19, 1  ;;  %s1559_s19 = sphi %s1597_s19, %s16_s19   ;;  %s1555_s18 = sphi %s1595_s18, %s2478_s18   ;;  %s1551_s17 = sphi %s1593_s17, %s2477_s17  }
   0x4   : > { %p37_p1 = scmp.ge.s32.totalorder %s35_s3, 2  ;;  %p225_p2 = scmp.lt.s32.totalorder %s1559_s19, 3 }
   0x6   : > { %s2480_s3 = smov (%p37_p1, %s35_s3), 0  ;;  %p226_p3 = pnand %p1335_p0, %p225_p2 }
   0x8   : > { %229 = sbr.rel (%p226_p3) target bundleno = 791 (0x317), region = 36 }
   0xd   : > { %p277_p4 = scmp.lt.s32.totalorder %s1551_s17, 1  ;;  %v320_v1 = vlaneseq  ;;  %v1561_v2 = vmov 1966171168   ;;  %v1562_v4 = vmov 0   ;;  %vm445_vm0 = vcmask 1040384  }
   0xe   : > { %v383_v3 = vunpack.c.l.s4 %v1561_v2  ;;  %484 = vmatprep.mubr.bf16.mxu0 %v1562_v4  ;;  %1398 = vset.pattern.permute.xlu1 %v1562_v4  ;;  %vm396_vm1 = vcmask 15360   ;;  %v2386_v38 = vmov 0  ;;  %v1563_v40 = vmov -inf  }
   0xf   : > { %s2482_s17 = smov (!%p277_p4, %s1551_s17), 1  ;;  %v1616_v5 = vshrl.u32 %v320_v1, 7  ;;  %vm1679_vm2 = vcmp.lt.s32.totalorder %v320_v1, 256  ;;  %v1564_v41 = vmov 0.0  }
  0x10   : > { %v384_v6 = vunpack.c.0.s8 %v383_v3  ;;  %s1369_s20 = smul.u32 24, %s2482_s17  ;;  %s1336_s21 = sshll.u32 %s2482_s17, 1  ;;  %v2387_v38 = vsel %vm1679_vm2, 4294967295, %v2386_v38  ;;  %324 = vst.msk [vmem:[#allocation2] sm:$0x3] %vm1679_vm2, %v1563_v40 }
  0x11   : > { %s283_s24 = scalar_lea.vmem %s2330_s0, %s1336_s21  ;;  %2388 = vst [vmem:[#allocation8_spill] sm:$0xff] %v2387_v38  ;;  %325 = vst.msk [vmem:[#allocation3] sm:$0x3] %vm1679_vm2, %v1564_v41  ;;  %s1367_s28 = sshll.u32 %s2482_s17, 5 }
  0x12   : > { %v1624_v7 = vsub.s32 %v384_v6, %v1616_v5  ;;  %s1629_s27 = scalar_lea.vmem %s2331_s1, %s1369_s20  ;;  %v1344_v8 = vld.sshfl [vmem:[%s283_s24] sm:$0x11 pattern:$0x75316420]  ;;  %s303_s5 = scalar_lea.vmem %s2332_s2, %s1367_s28 }
  0x13   : > { %v332_v9 = vld [vmem:[%s1629_s27 + $0x10] sm:$0x11]  ;;  %v381_v10 = vcombine.high %v1344_v8, %v1344_v8  ;;  %s313_s8 = scalar_lea.vmem %s2334_s4, %s1367_s28 }
  0x14   : > { %2384 = vst [vmem:[#allocation6_spill] sm:$0xff] %v1624_v7  ;;  %v388_v11 = vrot.slane %v1344_v8, %v1624_v7  ;;  %v1342_v12 = vcombine.low %v332_v9, %v332_v9  ;;  %v1343_v15 = vcombine.high %v332_v9, %v332_v9 }
  0x15   : > { %v395_v13 = vrot.slane %v381_v10, %v1624_v7 }
  0x16   : > { %v447_v14 = vsel %vm445_vm0, %v388_v11, 0  ;;  %341 = vxpose.xlu0.c.b16.start.end [1/1] (short) %v1342_v12, 128 }
  0x17   : > { %1345 = vmatprep.subr.msk.bf16.mxu0 %vm445_vm0, %v395_v13 }
  0x18   : > { %467 = vmatpush1.bf16.msra.mxu0 %v447_v14 }
  0x33   : > { %357 = vxpose.xlu0.c.b16.start.end [1/1] (short) %v1343_v15, 128 }
  0x3c   : > { %1399 = vset.pattern.permute.xlu0 %v1562_v4 }
  0x78   : > { %v349_v16 = vpop.trf.xlu0 }
  0x79   : > { %1346 = vmatmul.mubr.msk.bf16.vlgmr.msra.gmra.mxu0 %vm396_vm1, %v349_v16 }
  0x7a   : > { %494 = vmatprep.mubr.bf16.mxu0 %v1562_v4 }
  0x7c   : > { %v350_v17 = vpop.trf.xlu0 }
  0x80   : > { %v351_v18 = vpop.trf.xlu0 }
  0x81   : > { %1347 = vmatmul.mubr.msk.bf16.gmra.mxu0 %vm396_vm1, %v350_v17 }
  0x82   : > { %504 = vmatprep.mubr.bf16.mxu0 %v1562_v4 }
  0x84   : > { %v352_v19 = vpop.trf.xlu0 }
  0x88   : > { %v353_v20 = vpop.trf.xlu0 }
  0x89   : > { %1348 = vmatmul.mubr.msk.bf16.gmra.mxu0 %vm396_vm1, %v351_v18 }
  0x8a   : > { %514 = vmatprep.mubr.bf16.mxu0 %v1562_v4 }
  0x8c   : > { %v354_v21 = vpop.trf.xlu0 }
  0x90   : > { %v355_v22 = vpop.trf.xlu0 }
  0x91   : > { %1349 = vmatmul.mubr.msk.bf16.gmra.mxu0 %vm396_vm1, %v352_v19 }
  0x92   : > { %524 = vmatprep.mubr.bf16.mxu0 %v1562_v4 }
  0x94   : > { %v356_v23 = vpop.trf.xlu0 }
  0x98   : > { %v365_v24 = vpop.trf.xlu0 }
  0x99   : > { %1350 = vmatmul.mubr.msk.bf16.gmra.mxu0 %vm396_vm1, %v353_v20 }
  0x9a   : > { %534 = vmatprep.mubr.bf16.mxu0 %v1562_v4 }
  0x9c   : > { %v366_v25 = vpop.trf.xlu0 }
  0xa0   : > { %v367_v26 = vpop.trf.xlu0 }
  0xa1   : > { %1351 = vmatmul.mubr.msk.bf16.gmra.mxu0 %vm396_vm1, %v354_v21 }
  0xa2   : > { %544 = vmatprep.mubr.bf16.mxu0 %v1562_v4 }
  0xa4   : > { %v368_v27 = vpop.trf.xlu0 }
  0xa8   : > { %v369_v28 = vpop.trf.xlu0 }
  0xa9   : > { %1352 = vmatmul.mubr.msk.bf16.gmra.mxu0 %vm396_vm1, %v355_v22 }
  0xaa   : > { %554 = vmatprep.mubr.bf16.mxu0 %v1562_v4 }
  0xac   : > { %v370_v29 = vpop.trf.xlu0 }
  0xb0   : > { %v371_v30 = vpop.trf.xlu0 }
  0xb1   : > { %1353 = vmatmul.mubr.msk.bf16.gmra.mxu0 %vm396_vm1, %v356_v23 }
  0xb2   : > { %564 = vmatprep.mubr.bf16.mxu0 %v1562_v4 }
  0xb4   : > { %v372_v31 = vpop.trf.xlu0 }
  0xb9   : > { %1354 = vmatmul.mubr.msk.bf16.gmra.mxu0 %vm396_vm1, %v365_v24 }
  0xba   : > { %574 = vmatprep.mubr.bf16.mxu0 %v1562_v4 }
  0xc1   : > { %1355 = vmatmul.mubr.msk.bf16.gmra.mxu0 %vm396_vm1, %v366_v25 }
  0xc2   : > { %584 = vmatprep.mubr.bf16.mxu0 %v1562_v4 }
  0xc9   : > { %1356 = vmatmul.mubr.msk.bf16.gmra.mxu0 %vm396_vm1, %v367_v26 }
  0xca   : > { %594 = vmatprep.mubr.bf16.mxu0 %v1562_v4 }
  0xd1   : > { %1357 = vmatmul.mubr.msk.bf16.gmra.mxu0 %vm396_vm1, %v368_v27 }
  0xd2   : > { %604 = vmatprep.mubr.bf16.mxu0 %v1562_v4 }
  0xd9   : > { %1358 = vmatmul.mubr.msk.bf16.gmra.mxu0 %vm396_vm1, %v369_v28 }
  0xda   : > { %614 = vmatprep.mubr.bf16.mxu0 %v1562_v4 }
  0xe1   : > { %1359 = vmatmul.mubr.msk.bf16.gmra.mxu0 %vm396_vm1, %v370_v29 }
  0xe2   : > { %624 = vmatprep.mubr.bf16.mxu0 %v1562_v4 }
  0xe9   : > { %1360 = vmatmul.mubr.msk.bf16.gmra.mxu0 %vm396_vm1, %v371_v30 }
  0xea   : > { %634 = vmatprep.mubr.bf16.mxu0 %v1562_v4 }
  0xf1   : > { %1361 = vmatmul.mubr.msk.bf16.gmra.mxu0 %vm396_vm1, %v372_v31 }
 0x139   : > { %v1666_v32 = vpop.f32.mrf.mxu0 }
 0x13b   : > { %v1668_v33 = vpop.f32.mrf.mxu0 }
 0x13d   : > { %v1670_v34 = vpop.f32.mrf.mxu0 }
 0x13f   : > { %v1672_v35 = vpop.f32.mrf.mxu0 }
 0x141   : > { %v1674_v36 = vpop.f32.mrf.mxu0 }
 0x142   : > { %v646_v22 = vmax.f32 %v1666_v32, %v1674_v36 }
 0x143   : > { %v1676_v37 = vpop.f32.mrf.mxu0 }
 0x144   : > { %2385 = vst [vmem:[#allocation7_spill] sm:$0xff] %v1676_v37  ;;  %v683_v25 = vmax.f32 %v1668_v33, %v1676_v37 }
 0x145   : > { %v1683_v39 = vpop.f32.mrf.mxu0 }
 0x146   : > { %2389 = vst [vmem:[#allocation9_spill] sm:$0xff] %v1683_v39  ;;  %v647_v23 = vmax.f32 %v1670_v34, %v1683_v39 }
 0x147   : > { %v1689_v42 = vpop.f32.mrf.mxu0 }
 0x148   : > { %2390 = vst [vmem:[#allocation10_spill] sm:$0xff] %v1689_v42  ;;  %v684_v26 = vmax.f32 %v1672_v35, %v1689_v42 }
 0x149   : > { %v1691_v43 = vpop.f32.mrf.mxu0 }
 0x14a   : > { %v648_v27 = vmax.f32 %v646_v22, %v1691_v43 }
 0x14b   : > { %v1693_v44 = vpop.f32.mrf.mxu0 }
 0x14c   : > { %v685_v30 = vmax.f32 %v683_v25, %v1693_v44 }
 0x14d   : > { %v1695_v45 = vpop.f32.mrf.mxu0 }
 0x14e   : > { %2391 = vst [vmem:[#allocation11_spill] sm:$0xff] %v1695_v45  ;;  %v649_v28 = vmax.f32 %v647_v23, %v1695_v45 }
 0x14f   : > { %v1697_v46 = vpop.f32.mrf.mxu0 }
 0x150   : > { %v686_v31 = vmax.f32 %v684_v26, %v1697_v46 }
 0x151   : > { %v1699_v47 = vpop.f32.mrf.mxu0 }
 0x152   : > { %v650_v40 = vmax.f32 %v648_v27, %v1699_v47 }
 0x153   : > { %v1701_v48 = vpop.f32.mrf.mxu0 }
 0x154   : > { %v687_v37 = vmax.f32 %v685_v30, %v1701_v48 }
 0x155   : > { %v1703_v49 = vpop.f32.mrf.mxu0 }
 0x156   : > { %2392 = vst [vmem:[#allocation12_spill] sm:$0xff] %v1703_v49  ;;  %v651_v41 = vmax.f32 %v649_v28, %v1703_v49 }
 0x157   : > { %v1705_v50 = vpop.f32.mrf.mxu0 }
 0x158   : > { %v688_v42 = vmax.f32 %v686_v31, %v1705_v50 }
 0x159   : > { %v1707_v51 = vpop.f32.mrf.mxu0 }
 0x15a   : > { %v652_v22 = vmax.f32 %v650_v40, %v1707_v51 }
 0x15b   : > { %v1709_v52 = vpop.f32.mrf.mxu0 }
 0x15c   : > { %v689_v25 = vmax.f32 %v687_v37, %v1709_v52 }
 0x15d   : > { %v1711_v53 = vpop.f32.mrf.mxu0 }
 0x15e   : > { %2393 = vst [vmem:[#allocation13_spill] sm:$0xff] %v1711_v53  ;;  %v653_v23 = vmax.f32 %v651_v41, %v1711_v53 }
 0x15f   : > { %v1713_v54 = vpop.f32.mrf.mxu0 }
 0x160   : > { %v690_v26 = vmax.f32 %v688_v42, %v1713_v54 }
 0x161   : > { %v1715_v55 = vpop.f32.mrf.mxu0 }
 0x162   : > { %v654_v27 = vmax.f32 %v652_v22, %v1715_v55 }
 0x163   : > { %v1717_v56 = vpop.f32.mrf.mxu0 }
 0x164   : > { %v691_v30 = vmax.f32 %v689_v25, %v1717_v56 }
 0x165   : > { %v1719_v57 = vpop.f32.mrf.mxu0 }
 0x166   : > { %2394 = vst [vmem:[#allocation14_spill] sm:$0xff] %v1719_v57  ;;  %v655_v28 = vmax.f32 %v653_v23, %v1719_v57 }
 0x167   : > { %v1721_v58 = vpop.f32.mrf.mxu0 }
 0x168   : > { %v692_v31 = vmax.f32 %v690_v26, %v1721_v58 }
 0x169   : > { %v1723_v59 = vpop.f32.mrf.mxu0 }
 0x16a   : > { %v656_v40 = vmax.f32 %v654_v27, %v1723_v59 }
 0x16b   : > { %v1725_v60 = vpop.f32.mrf.mxu0 }
 0x16c   : > { %v693_v37 = vmax.f32 %v691_v30, %v1725_v60 }
 0x16d   : > { %v1727_v61 = vpop.f32.mrf.mxu0 }
 0x16e   : > { %2395 = vst [vmem:[#allocation15_spill] sm:$0xff] %v1727_v61  ;;  %v657_v41 = vmax.f32 %v655_v28, %v1727_v61 }
 0x16f   : > { %v1729_v62 = vpop.f32.mrf.mxu0 }
 0x170   : > { %v694_v42 = vmax.f32 %v692_v31, %v1729_v62 }
 0x171   : > { %v1731_v63 = vpop.f32.mrf.mxu0 }
 0x172   : > { %v658_v22 = vmax.f32 %v656_v40, %v1731_v63 }
 0x173   : > { %v1733_v0 = vpop.f32.mrf.mxu0 }
 0x174   : > { %v695_v25 = vmax.f32 %v693_v37, %v1733_v0 }
 0x175   : > { %v1735_v1 = vpop.f32.mrf.mxu0 }
 0x176   : > { %2396 = vst [vmem:[#allocation16_spill] sm:$0xff] %v1735_v1  ;;  %v659_v23 = vmax.f32 %v657_v41, %v1735_v1 }
 0x177   : > { %v1737_v2 = vpop.f32.mrf.mxu0 }
 0x178   : > { %v696_v26 = vmax.f32 %v694_v42, %v1737_v2 }
 0x179   : > { %v1739_v3 = vpop.f32.mrf.mxu0 }
 0x17a   : > { %v660_v27 = vmax.f32 %v658_v22, %v1739_v3 }
 0x17b   : > { %v1741_v4 = vpop.f32.mrf.mxu0 }
 0x17c   : > { %v697_v30 = vmax.f32 %v695_v25, %v1741_v4 }
 0x17d   : > { %v1743_v6 = vpop.f32.mrf.mxu0 }
 0x17e   : > { %2397 = vst [vmem:[#allocation17_spill] sm:$0xff] %v1743_v6  ;;  %v661_v28 = vmax.f32 %v659_v23, %v1743_v6 }
 0x17f   : > { %v1745_v8 = vpop.f32.mrf.mxu0 }
 0x180   : > { %v698_v31 = vmax.f32 %v696_v26, %v1745_v8 }
 0x181   : > { %v1747_v9 = vpop.f32.mrf.mxu0 }
 0x182   : > { %v662_v40 = vmax.f32 %v660_v27, %v1747_v9 }
 0x183   : > { %v1749_v10 = vpop.f32.mrf.mxu0 }
 0x184   : > { %v699_v37 = vmax.f32 %v697_v30, %v1749_v10 }
 0x185   : > { %v1751_v11 = vpop.f32.mrf.mxu0 }
 0x186   : > { %2398 = vst [vmem:[#allocation18_spill] sm:$0xff] %v1751_v11  ;;  %v663_v41 = vmax.f32 %v661_v28, %v1751_v11 }
 0x187   : > { %v1753_v12 = vpop.f32.mrf.mxu0 }
 0x188   : > { %v700_v42 = vmax.f32 %v698_v31, %v1753_v12 }
 0x189   : > { %v1755_v13 = vpop.f32.mrf.mxu0 }
 0x18a   : > { %v664_v22 = vmax.f32 %v662_v40, %v1755_v13 }
 0x18b   : > { %v1757_v14 = vpop.f32.mrf.mxu0 }
 0x18c   : > { %v701_v25 = vmax.f32 %v699_v37, %v1757_v14 }
 0x18d   : > { %v1759_v15 = vpop.f32.mrf.mxu0 }
 0x18e   : > { %2399 = vst [vmem:[#allocation19_spill] sm:$0xff] %v1759_v15  ;;  %v665_v23 = vmax.f32 %v663_v41, %v1759_v15 }
 0x18f   : > { %v1761_v16 = vpop.f32.mrf.mxu0 }
 0x190   : > { %v702_v26 = vmax.f32 %v700_v42, %v1761_v16 }
 0x191   : > { %v1763_v17 = vpop.f32.mrf.mxu0 }
 0x192   : > { %v666_v27 = vmax.f32 %v664_v22, %v1763_v17 }
 0x193   : > { %v1765_v18 = vpop.f32.mrf.mxu0 }
 0x194   : > { %v703_v30 = vmax.f32 %v701_v25, %v1765_v18 }
 0x195   : > { %v1767_v19 = vpop.f32.mrf.mxu0 }
 0x196   : > { %2400 = vst [vmem:[#allocation20_spill] sm:$0xff] %v1767_v19  ;;  %v667_v28 = vmax.f32 %v665_v23, %v1767_v19 }
 0x197   : > { %v1769_v20 = vpop.f32.mrf.mxu0 }
 0x198   : > { %v704_v31 = vmax.f32 %v702_v26, %v1769_v20 }
 0x199   : > { %v1771_v21 = vpop.f32.mrf.mxu0 }
 0x19a   : > { %v668_v40 = vmax.f32 %v666_v27, %v1771_v21 }
 0x19b   : > { %v1777_v24 = vpop.f32.mrf.mxu0 }
 0x19c   : > { %v705_v37 = vmax.f32 %v703_v30, %v1777_v24 }
 0x19d   : > { %v1785_v29 = vpop.f32.mrf.mxu0 }
 0x19e   : > { %2401 = vst [vmem:[#allocation21_spill] sm:$0xff] %v1785_v29  ;;  %v669_v41 = vmax.f32 %v667_v28, %v1785_v29 }
 0x19f   : > { %v1791_v39 = vpop.f32.mrf.mxu0 }
 0x1a0   : > { %v706_v42 = vmax.f32 %v704_v31, %v1791_v39 }
 0x1a1   : > { %v1797_v45 = vpop.f32.mrf.mxu0 }
 0x1a2   : > { %2402 = vst [vmem:[#allocation22_spill] sm:$0xff] %v1797_v45  ;;  %v670_v22 = vmax.f32 %v668_v40, %v1797_v45 }
 0x1a3   : > { %v1803_v49 = vpop.f32.mrf.mxu0 }
 0x1a4   : > { %2403 = vst [vmem:[#allocation23_spill] sm:$0xff] %v1803_v49  ;;  %v707_v25 = vmax.f32 %v705_v37, %v1803_v49 }
 0x1a5   : > { %v1809_v53 = vpop.f32.mrf.mxu0 }
 0x1a6   : > { %2404 = vst [vmem:[#allocation24_spill] sm:$0xff] %v1809_v53  ;;  %v671_v23 = vmax.f32 %v669_v41, %v1809_v53 }
 0x1a7   : > { %v1815_v57 = vpop.f32.mrf.mxu0 }
 0x1a8   : > { %2405 = vst [vmem:[#allocation25_spill] sm:$0xff] %v1815_v57  ;;  %v708_v26 = vmax.f32 %v706_v42, %v1815_v57 }
 0x1a9   : > { %v1821_v61 = vpop.f32.mrf.mxu0 }
 0x1aa   : > { %2406 = vst [vmem:[#allocation26_spill] sm:$0xff] %v1821_v61  ;;  %v672_v27 = vmax.f32 %v670_v22, %v1821_v61 }
 0x1ab   : > { %v1827_v1 = vpop.f32.mrf.mxu0 }
 0x1ac   : > { %2407 = vst [vmem:[#allocation27_spill] sm:$0xff] %v1827_v1  ;;  %v709_v30 = vmax.f32 %v707_v25, %v1827_v1 }
 0x1ad   : > { %v1833_v6 = vpop.f32.mrf.mxu0 }
 0x1ae   : > { %2408 = vst [vmem:[#allocation28_spill] sm:$0xff] %v1833_v6  ;;  %v673_v28 = vmax.f32 %v671_v23, %v1833_v6 }
 0x1af   : > { %v1839_v11 = vpop.f32.mrf.mxu0 }
 0x1b0   : > { %2409 = vst [vmem:[#allocation29_spill] sm:$0xff] %v1839_v11  ;;  %v710_v31 = vmax.f32 %v708_v26, %v1839_v11 }
 0x1b1   : > { %v1845_v15 = vpop.f32.mrf.mxu0 }
 0x1b2   : > { %2410 = vst [vmem:[#allocation30_spill] sm:$0xff] %v1845_v15  ;;  %v674_v40 = vmax.f32 %v672_v27, %v1845_v15 }
 0x1b3   : > { %v1851_v19 = vpop.f32.mrf.mxu0 }
 0x1b4   : > { %v711_v37 = vmax.f32 %v709_v30, %v1851_v19 }
 0x1b5   : > { %v1857_v29 = vpop.f32.mrf.mxu0 }
 0x1b6   : > { %2411 = vst [vmem:[#allocation31_spill] sm:$0xff] %v1857_v29  ;;  %v675_v41 = vmax.f32 %v673_v28, %v1857_v29 }
 0x1b7   : > { %v1863_v53 = vpop.f32.mrf.mxu0 }
 0x1b8   : > { %v676_v49 = vmax.f32 %v674_v40, %v675_v41  ;;  %v712_v42 = vmax.f32 %v710_v31, %v1863_v53  ;;  %v1868_v40 = vld [vmem:[#allocation2] sm:$0x3] }
 0x1b9   : > { %2412 = vst [vmem:[#allocation32_spill] sm:$0xff] %v1868_v40 }
 0x1ba   : > { %v677_v22 = vrot.slane %v676_v49, 4  ;;  %v713_v61 = vmax.f32 %v711_v37, %v712_v42 }
 0x1bc   : > { %v678_v23 = vmax.f32 %v676_v49, %v677_v22  ;;  %v714_v6 = vrot.slane %v713_v61, 4  ;;  %v2416_v22 = vld [vmem:[#allocation7_spill] sm:$0xff] }
 0x1be   : > { %v679_v57 = vrot.slane %v678_v23, 2  ;;  %v715_v25 = vmax.f32 %v713_v61, %v714_v6  ;;  %v1884_v6 = vsub.s32 1, %v1616_v5 }
 0x1c0   : > { %v680_v1 = vmax.f32 %v678_v23, %v679_v57  ;;  %v716_v26 = vrot.slane %v715_v25, 2  ;;  %v1404_v57 = vld [vmem:[%s1629_s27 + $0x4] ss:$8 sps:$4 sm:$0xff]   ;;  %2415 = vst [vmem:[#allocation35_spill] sm:$0xff] %v1884_v6 }
 0x1c1   : > { %1138 = vmatprep.mubr.bf16.mxu1 %v1404_v57 }
 0x1c2   : > { %v681_v11 = vrot.slane %v680_v1, 1  ;;  %v717_v27 = vmax.f32 %v715_v25, %v716_v26  ;;  %v2417_v25 = vld [vmem:[#allocation9_spill] sm:$0xff] }
 0x1c4   : > { %v718_v15 = vrot.slane %v717_v27, 1  ;;  %v682_v28 = vmax.f32 %v680_v1, %v681_v11  ;;  %v1364_v1 = vld [vmem:[#allocation5] ss:$0 sm:$0xff] }
 0x1c5   : > { %1189 = vperm.xlu1 %1398, %v1364_v1   ;;  %v2419_v1 = vld [vmem:[#allocation11_spill] sm:$0xff] }
 0x1c6   : > { %v719_v29 = vmax.f32 %v717_v27, %v718_v15 }
 0x1c8   : > { %v722_v45 = vcombine.low %v682_v28, %v719_v29 }
 0x1ca   : > { %v729_v30 = vrot.slane %v722_v45, %v1624_v7  ;;  %v1881_v45 = vsub.s32 0, %v1616_v5 }
 0x1cc   : > { %v736_v31 = vrot.slane %v729_v30, %v1624_v7  ;;  %2414 = vst [vmem:[#allocation34_spill] sm:$0xff] %v1881_v45 }
 0x1ce   : > { %v1872_v49 = vmax.f32 %v1868_v40, %v736_v31 }
 0x1d0   : > { %2413 = vst [vmem:[#allocation33_spill] sm:$0xff] %v1872_v49  ;;  %1157 = vst.msk [vmem:[#allocation2] sm:$0x3] %vm1679_vm2, %v1872_v49  ;;  %v1888_v11 = vrot.slane %v1872_v49, %v1881_v45  ;;  %v1892_v15 = vrot.slane %v1872_v49, %v1884_v6 }
 0x1d2   : > { %v750_v29 = vsub.f32 %v1666_v32, %v1888_v11  ;;  %v751_v41 = vsub.f32 %v1668_v33, %v1892_v15  ;;  %v752_v37 = vsub.f32 %v1670_v34, %v1888_v11  ;;  %v753_v5 = vsub.f32 %v1672_v35, %v1892_v15  ;;  %v2418_v33 = vld [vmem:[#allocation10_spill] sm:$0xff] }
 0x1d3   : > { %v754_v42 = vsub.f32 %v1674_v36, %v1888_v11  ;;  %v755_v23 = vsub.f32 %v2416_v22, %v1892_v15  ;;  %v756_v26 = vsub.f32 %v2417_v25, %v1888_v11  ;;  %v757_v30 = vsub.f32 %v2418_v33, %v1892_v15 }
 0x1d4   : > { %v814_v27 = vmul.f32 1.442695, %v750_v29  ;;  %v816_v32 = vmul.f32 1.442695, %v751_v41  ;;  %v818_v28 = vmul.f32 1.442695, %v752_v37  ;;  %v758_v34 = vsub.f32 %v1691_v43, %v1888_v11 }
 0x1d5   : > { %v820_v31 = vmul.f32 1.442695, %v753_v5  ;;  %v822_v35 = vmul.f32 1.442695, %v754_v42  ;;  %v759_v36 = vsub.f32 %v1693_v44, %v1892_v15  ;;  %v824_v57 = vmul.f32 1.442695, %v755_v23 }
 0x1d6   : > { %1405 = vpow2.f32 %v814_v27  ;;  %v760_v22 = vsub.f32 %v2419_v1, %v1888_v11  ;;  %v826_v29 = vmul.f32 1.442695, %v756_v26  ;;  %v761_v41 = vsub.f32 %v1697_v46, %v1892_v15  ;;  %v2420_v23 = vld [vmem:[#allocation12_spill] sm:$0xff] }
 0x1d7   : > { %1407 = vpow2.f32 %v816_v32  ;;  %v828_v37 = vmul.f32 1.442695, %v757_v30  ;;  %v762_v43 = vsub.f32 %v1699_v47, %v1888_v11  ;;  %v830_v5 = vmul.f32 1.442695, %v758_v34 }
 0x1d8   : > { %1409 = vpow2.f32 %v818_v28  ;;  %v763_v44 = vsub.f32 %v1701_v48, %v1892_v15  ;;  %v832_v42 = vmul.f32 1.442695, %v759_v36  ;;  %v764_v25 = vsub.f32 %v2420_v23, %v1888_v11  ;;  %v2421_v28 = vld [vmem:[#allocation13_spill] sm:$0xff] }
 0x1d9   : > { %1411 = vpow2.f32 %v820_v31  ;;  %v834_v26 = vmul.f32 1.442695, %v760_v22  ;;  %v765_v46 = vsub.f32 %v1705_v50, %v1892_v15  ;;  %v836_v27 = vmul.f32 1.442695, %v761_v41 }
 0x1da   : > { %1413 = vpow2.f32 %v822_v35  ;;  %v766_v47 = vsub.f32 %v1707_v51, %v1888_v11  ;;  %v767_v32 = vsub.f32 %v1709_v52, %v1892_v15  ;;  %v838_v48 = vmul.f32 1.442695, %v762_v43  ;;  %v2422_v52 = vld [vmem:[#allocation14_spill] sm:$0xff] }
 0x1db   : > { %1415 = vpow2.f32 %v824_v57  ;;  %v768_v33 = vsub.f32 %v2421_v28, %v1888_v11  ;;  %v769_v30 = vsub.f32 %v1713_v54, %v1892_v15  ;;  %v840_v31 = vmul.f32 1.442695, %v763_v44  ;;  %v2426_v44 = vld [vmem:[#allocation16_spill] sm:$0xff] }
 0x1dc   : > { %1417 = vpow2.f32 %v826_v29  ;;  %v770_v50 = vsub.f32 %v1715_v55, %v1888_v11  ;;  %v771_v34 = vsub.f32 %v1717_v56, %v1892_v15  ;;  %v842_v51 = vmul.f32 1.442695, %v764_v25  ;;  %v2424_v56 = vld [vmem:[#allocation15_spill] sm:$0xff] }
 0x1dd   : > { %1419 = vpow2.f32 %v828_v37  ;;  %v772_v35 = vsub.f32 %v2422_v52, %v1888_v11  ;;  %v773_v36 = vsub.f32 %v1721_v58, %v1892_v15  ;;  %v844_v57 = vmul.f32 1.442695, %v765_v46 }
 0x1de   : > { %1421 = vpow2.f32 %v830_v5  ;;  %v774_v54 = vsub.f32 %v1723_v59, %v1888_v11  ;;  %v775_v1 = vsub.f32 %v1725_v60, %v1892_v15  ;;  %v846_v55 = vmul.f32 1.442695, %v766_v47 }
 0x1df   : > { %1423 = vpow2.f32 %v832_v42  ;;  %v776_v29 = vsub.f32 %v2424_v56, %v1888_v11  ;;  %v777_v41 = vsub.f32 %v1729_v62, %v1892_v15  ;;  %v848_v58 = vmul.f32 1.442695, %v767_v32 }
 0x1e0   : > { %1425 = vpow2.f32 %v834_v26  ;;  %v778_v59 = vsub.f32 %v1731_v63, %v1888_v11  ;;  %v779_v60 = vsub.f32 %v1733_v0, %v1892_v15  ;;  %v850_v43 = vmul.f32 1.442695, %v768_v33 }
 0x1e1   : > { %1427 = vpow2.f32 %v836_v27  ;;  %v780_v42 = vsub.f32 %v2426_v44, %v1888_v11  ;;  %v781_v62 = vsub.f32 %v1737_v2, %v1892_v15  ;;  %v852_v23 = vmul.f32 1.442695, %v769_v30  ;;  %v2427_v27 = vld [vmem:[#allocation17_spill] sm:$0xff] }
 0x1e2   : > { %1429 = vpow2.f32 %v838_v48  ;;  %v782_v63 = vsub.f32 %v1739_v3, %v1888_v11  ;;  %v783_v0 = vsub.f32 %v1741_v4, %v1892_v15  ;;  %v854_v26 = vmul.f32 1.442695, %v770_v50 }
 0x1e3   : > { %v1946_v22 = vpop.eup %1405  ;;  %1431 = vpow2.f32 %v840_v31  ;;  %v784_v47 = vsub.f32 %v2427_v27, %v1888_v11  ;;  %v785_v2 = vsub.f32 %v1745_v8, %v1892_v15  ;;  %v856_v32 = vmul.f32 1.442695, %v771_v34  ;;  %v2428_v31 = vld [vmem:[#allocation18_spill] sm:$0xff] }
 0x1e4   : > { %2423 = vst [vmem:[#allocation7_spill] sm:$0xff] %v1946_v22  ;;  %v1952_v37 = vpop.eup %1407  ;;  %1433 = vpow2.f32 %v842_v51  ;;  %v786_v3 = vsub.f32 %v1747_v9, %v1888_v11  ;;  %v858_v33 = vmul.f32 1.442695, %v772_v35  ;;  %v860_v51 = vmul.f32 1.442695, %v773_v36 }
 0x1e5   : > { %v1958_v5 = vpop.eup %1409  ;;  %1435 = vpow2.f32 %v844_v57  ;;  %v862_v57 = vmul.f32 1.442695, %v774_v54  ;;  %v870_v54 = vmul.f32 1.442695, %v778_v59  ;;  %v874_v36 = vmul.f32 1.442695, %v780_v42 }
 0x1e6   : > { %2425 = vst [vmem:[#allocation9_spill] sm:$0xff] %v1958_v5  ;;  %v1964_v25 = vpop.eup %1411  ;;  %1437 = vpow2.f32 %v846_v55  ;;  %v947_v34 = vadd.f32 %v1958_v5, %v1946_v22  ;;  %v876_v50 = vmul.f32 1.442695, %v781_v62  ;;  %v880_v62 = vmul.f32 1.442695, %v783_v0 }
 0x1e7   : > { %v1970_v46 = vpop.eup %1413  ;;  %1439 = vpow2.f32 %v848_v58  ;;  %v984_v55 = vadd.f32 %v1964_v25, %v1952_v37  ;;  %v864_v58 = vmul.f32 1.442695, %v775_v1  ;;  %v868_v1 = vmul.f32 1.442695, %v777_v41 }
 0x1e8   : > { %v1976_v48 = vpop.eup %1415  ;;  %1441 = vpow2.f32 %v850_v43  ;;  %v948_v43 = vadd.f32 %v1970_v46, %v947_v34  ;;  %v884_v0 = vmul.f32 1.442695, %v785_v2  ;;  %v2432_v2 = vsub.f32 %v1749_v10, %v1892_v15 }
 0x1e9   : > { %v1982_v30 = vpop.eup %1417  ;;  %1443 = vpow2.f32 %v852_v23  ;;  %v866_v23 = vmul.f32 1.442695, %v776_v29 }
 0x1ea   : > { %v1988_v52 = vpop.eup %1419  ;;  %1445 = vpow2.f32 %v854_v26  ;;  %v985_v26 = vadd.f32 %v1976_v48, %v984_v55  ;;  %v949_v34 = vadd.f32 %v1982_v30, %v948_v43  ;;  %v2429_v55 = vld [vmem:[#allocation19_spill] sm:$0xff]  ;;  %v878_v43 = vmul.f32 1.442695, %v782_v63 }
 0x1eb   : > { %v1994_v56 = vpop.eup %1421  ;;  %1447 = vpow2.f32 %v856_v32  ;;  %v872_v32 = vmul.f32 1.442695, %v779_v60  ;;  %v882_v63 = vmul.f32 1.442695, %v784_v47  ;;  %v886_v47 = vmul.f32 1.442695, %v786_v3 }
 0x1ec   : > { %v1999_v44 = vpop.eup %1423  ;;  %1449 = vpow2.f32 %v858_v33  ;;  %v986_v29 = vadd.f32 %v1988_v52, %v985_v26  ;;  %v950_v41 = vadd.f32 %v1994_v56, %v949_v34  ;;  %v2433_v3 = vsub.f32 %v2428_v31, %v1888_v11 }
 0x1ed   : > { %v2004_v61 = vpop.eup %1425  ;;  %1451 = vpow2.f32 %v860_v51 }
 0x1ee   : > { %v2009_v35 = vpop.eup %1427  ;;  %1453 = vpow2.f32 %v862_v57  ;;  %v987_v59 = vadd.f32 %v1999_v44, %v986_v29  ;;  %v951_v60 = vadd.f32 %v2004_v61, %v950_v41  ;;  %v2430_v29 = vld [vmem:[#allocation20_spill] sm:$0xff] }
 0x1ef   : > { %v2014_v33 = vpop.eup %1429  ;;  %1455 = vpow2.f32 %v864_v58 }
 0x1f0   : > { %v2019_v51 = vpop.eup %1431  ;;  %1457 = vpow2.f32 %v866_v23  ;;  %v988_v42 = vadd.f32 %v2009_v35, %v987_v59 }
 0x1f1   : > { %v2024_v57 = vpop.eup %1433  ;;  %1459 = vpow2.f32 %v868_v1  ;;  %v952_v1 = vadd.f32 %v2014_v33, %v951_v60 }
 0x1f2   : > { %v2029_v58 = vpop.eup %1435  ;;  %1461 = vpow2.f32 %v870_v54  ;;  %v989_v59 = vadd.f32 %v2019_v51, %v988_v42 }
 0x1f3   : > { %v2034_v23 = vpop.eup %1437  ;;  %1463 = vpow2.f32 %v872_v32  ;;  %v953_v32 = vadd.f32 %v2024_v57, %v952_v1  ;;  %v888_v1 = vmul.f32 1.442695, %v2432_v2 }
 0x1f4   : > { %v2042_v41 = vpop.eup %1439  ;;  %1465 = vpow2.f32 %v874_v36  ;;  %v990_v36 = vadd.f32 %v2029_v58, %v989_v59 }
 0x1f5   : > { %v2050_v28 = vpop.eup %1441  ;;  %1467 = vpow2.f32 %v876_v50  ;;  %v2431_v50 = vld [vmem:[#allocation21_spill] sm:$0xff]  ;;  %v954_v4 = vadd.f32 %v2034_v23, %v953_v32  ;;  %v2435_v32 = vsub.f32 %v1753_v12, %v1892_v15  ;;  %v2450_v12 = vld [vmem:[#allocation30_spill] sm:$0xff] }
 0x1f6   : > { %v2058_v60 = vpop.eup %1443  ;;  %1469 = vpow2.f32 %v878_v43  ;;  %v890_v43 = vmul.f32 1.442695, %v2433_v3  ;;  %v991_v59 = vadd.f32 %v2042_v41, %v990_v36  ;;  %v2437_v36 = vsub.f32 %v1755_v13, %v1888_v11 }
 0x1f7   : > { %v2066_v42 = vpop.eup %1445  ;;  %1471 = vpow2.f32 %v880_v62  ;;  %v2434_v62 = vld [vmem:[#allocation22_spill] sm:$0xff]  ;;  %v892_v2 = vmul.f32 1.442695, %v2435_v32  ;;  %v955_v54 = vadd.f32 %v2050_v28, %v954_v4  ;;  %v2439_v4 = vsub.f32 %v1757_v14, %v1892_v15 }
 0x1f8   : > { %v2074_v27 = vpop.eup %1447  ;;  %1473 = vpow2.f32 %v882_v63  ;;  %v2436_v63 = vld [vmem:[#allocation23_spill] sm:$0xff]  ;;  %v894_v3 = vmul.f32 1.442695, %v2437_v36  ;;  %v992_v34 = vadd.f32 %v2058_v60, %v991_v59  ;;  %v2441_v13 = vsub.f32 %v2429_v55, %v1888_v11 }
 0x1f9   : > { %v2082_v8 = vpop.eup %1449  ;;  %1475 = vpow2.f32 %v884_v0  ;;  %v2438_v0 = vld [vmem:[#allocation24_spill] sm:$0xff]  ;;  %v896_v32 = vmul.f32 1.442695, %v2439_v4  ;;  %v956_v26 = vadd.f32 %v2066_v42, %v955_v54  ;;  %v2443_v14 = vsub.f32 %v1761_v16, %v1892_v15 }
 0x1fa   : > { %v2090_v9 = vpop.eup %1451  ;;  %1477 = vpow2.f32 %v886_v47  ;;  %v2440_v47 = vld [vmem:[#allocation25_spill] sm:$0xff]  ;;  %v898_v59 = vmul.f32 1.442695, %v2441_v13  ;;  %v993_v36 = vadd.f32 %v2074_v27, %v992_v34  ;;  %v2445_v55 = vsub.f32 %v1763_v17, %v1888_v11 }
 0x1fb   : > { %v2098_v10 = vpop.eup %1453  ;;  %1479 = vpow2.f32 %v888_v1  ;;  %v2442_v1 = vld [vmem:[#allocation26_spill] sm:$0xff]  ;;  %v900_v54 = vmul.f32 1.442695, %v2443_v14  ;;  %v957_v4 = vadd.f32 %v2082_v8, %v956_v26  ;;  %v2447_v16 = vsub.f32 %v1765_v18, %v1892_v15 }
 0x1fc   : > { %v1456_v31 = vpop.eup %1455  ;;  %1481 = vpow2.f32 %v890_v43  ;;  %v2444_v43 = vld [vmem:[#allocation27_spill] sm:$0xff]  ;;  %v902_v34 = vmul.f32 1.442695, %v2445_v55  ;;  %v994_v13 = vadd.f32 %v2090_v9, %v993_v36  ;;  %v2449_v17 = vsub.f32 %v2430_v29, %v1888_v11 }
 0x1fd   : > { %v2112_v45 = vpop.eup %1457  ;;  %1483 = vpow2.f32 %v892_v2  ;;  %v2446_v2 = vld [vmem:[#allocation28_spill] sm:$0xff]  ;;  %v904_v26 = vmul.f32 1.442695, %v2447_v16  ;;  %v958_v14 = vadd.f32 %v2098_v10, %v957_v4  ;;  %v2451_v18 = vsub.f32 %v1769_v20, %v1892_v15 }
 0x1fe   : > { %v1460_v6 = vpop.eup %1459  ;;  %1485 = vpow2.f32 %v894_v3  ;;  %v2448_v3 = vld [vmem:[#allocation29_spill] sm:$0xff]  ;;  %v906_v36 = vmul.f32 1.442695, %v2449_v17  ;;  %v995_v55 = vadd.f32 %v1456_v31, %v994_v13 }
 0x1ff   : > { %v1462_v7 = vpop.eup %1461  ;;  %1487 = vpow2.f32 %v896_v32  ;;  %v908_v16 = vmul.f32 1.442695, %v2451_v18  ;;  %v959_v4 = vadd.f32 %v2112_v45, %v958_v14 }
 0x200   : > { %v1464_v49 = vpop.eup %1463  ;;  %1489 = vpow2.f32 %v898_v59  ;;  %v2452_v59 = vsub.f32 %v1771_v21, %v1888_v11  ;;  %v996_v29 = vadd.f32 %v1460_v6, %v995_v55  ;;  %v2454_v21 = vsub.f32 %v2431_v50, %v1888_v11 }
 0x201   : > { %v1466_v40 = vpop.eup %1465  ;;  %1491 = vpow2.f32 %v900_v54  ;;  %v2453_v54 = vsub.f32 %v1777_v24, %v1892_v15  ;;  %v960_v5 = vadd.f32 %v1462_v7, %v959_v4  ;;  %v2455_v24 = vsub.f32 %v1791_v39, %v1892_v15 }
 0x202   : > { %v1468_v22 = vpop.eup %1467  ;;  %1493 = vpow2.f32 %v902_v34  ;;  %v910_v38 = vmul.f32 1.442695, %v2452_v59  ;;  %v1078_v17 = vpack.c.bf16 %v1466_v40, %v1462_v7  ;;  %v811_v34 = vsub.f32 %v1851_v19, %v1892_v15 }
 0x203   : > { %v2146_v13 = vpop.eup %1469  ;;  %1495 = vpow2.f32 %v904_v26  ;;  %v912_v32 = vmul.f32 1.442695, %v2453_v54  ;;  %v1079_v20 = vpack.c.bf16 %v1468_v22, %v1464_v49  ;;  %v914_v14 = vmul.f32 1.442695, %v2454_v21 }
 0x204   : > { %v2151_v18 = vpop.eup %1471  ;;  %1497 = vpow2.f32 %v906_v36  ;;  %v997_v55 = vadd.f32 %v1464_v49, %v996_v29  ;;  %v916_v26 = vmul.f32 1.442695, %v2455_v24  ;;  %v961_v7 = vadd.f32 %v1466_v40, %v960_v5 }
 0x205   : > { %v2158_v59 = vpop.eup %1473  ;;  %1499 = vpow2.f32 %v908_v16  ;;  %1106 = vmatprep.subr.bf16.mxu1 %v1079_v20  ;;  %v1077_v4 = vpack.c.bf16 %v1460_v6, %v1456_v31  ;;  %v2456_v19 = vsub.f32 %v2434_v62, %v1888_v11  ;;  %v2457_v39 = vsub.f32 %v2436_v63, %v1892_v15 }
 0x206   : > { %v2163_v54 = vpop.eup %1475  ;;  %1501 = vpow2.f32 %v910_v38  ;;  %v998_v50 = vadd.f32 %v1468_v22, %v997_v55  ;;  %1107 = vmatpush1.bf16.msra.mxu1 %v1078_v17  ;;  %v1080_v49 = vpack.c.bf16 %v2158_v59, %v2146_v13  ;;  %v962_v6 = vadd.f32 %v2146_v13, %v961_v7 }
 0x207   : > { %v918_v36 = vmul.f32 1.442695, %v2456_v19  ;;  %v2170_v16 = vpop.eup %1477  ;;  %1503 = vpow2.f32 %v912_v32  ;;  %v920_v40 = vmul.f32 1.442695, %v2457_v39  ;;  %1108 = vmatprep.subr.bf16.mxu1 %v1077_v4  ;;  %v1081_v38 = vpack.c.bf16 %v2163_v54, %v2151_v18 }
 0x208   : > { %v2178_v5 = vpop.eup %1479  ;;  %1505 = vpow2.f32 %v914_v14  ;;  %v2458_v22 = vsub.f32 %v2438_v0, %v1888_v11  ;;  %v999_v31 = vadd.f32 %v2151_v18, %v998_v50  ;;  %v1076_v32 = vpack.c.bf16 %v2112_v45, %v2098_v10  ;;  %v2460_v0 = vld [vmem:[#allocation31_spill] sm:$0xff] }
 0x209   : > { %v2186_v63 = vpop.eup %1481  ;;  %1507 = vpow2.f32 %v916_v26  ;;  %v2459_v29 = vsub.f32 %v2440_v47, %v1892_v15  ;;  %v963_v20 = vadd.f32 %v2158_v59, %v962_v6  ;;  %v1075_v21 = vpack.c.bf16 %v2090_v9, %v2074_v27 }
 0x20a   : > { %v922_v62 = vmul.f32 1.442695, %v2458_v22  ;;  %v2194_v14 = vpop.eup %1483  ;;  %v812_v55 = vsub.f32 %v2460_v0, %v1888_v11  ;;  %1509 = vpow2.f32 %v918_v36  ;;  %v2461_v45 = vsub.f32 %v2442_v1, %v1888_v11  ;;  %1109 = vmatpush1.bf16.msra.mxu1 %v1076_v32 }
 0x20b   : > { %v924_v17 = vmul.f32 1.442695, %v2459_v29  ;;  %v1000_v24 = vadd.f32 %v2163_v54, %v999_v31  ;;  %v2202_v47 = vpop.eup %1485  ;;  %v813_v26 = vsub.f32 %v1863_v53, %v1892_v15  ;;  %1511 = vpow2.f32 %v920_v40  ;;  %1110 = vmatprep.subr.bf16.mxu1 %v1075_v21 }
 0x20c   : > { %v926_v10 = vmul.f32 1.442695, %v2461_v45  ;;  %v2462_v27 = vsub.f32 %v2444_v43, %v1892_v15  ;;  %v964_v7 = vadd.f32 %v2170_v16, %v963_v20  ;;  %v2210_v4 = vpop.eup %1487  ;;  %1513 = vpow2.f32 %v922_v62 }
 0x20d   : > { %v2463_v1 = vsub.f32 %v2446_v2, %v1888_v11  ;;  %v1001_v36 = vadd.f32 %v2178_v5, %v1000_v24  ;;  %v1074_v53 = vpack.c.bf16 %v2082_v8, %v2066_v42  ;;  %v2218_v50 = vpop.eup %1489  ;;  %1515 = vpow2.f32 %v924_v17 }
 0x20e   : > { %v928_v9 = vmul.f32 1.442695, %v2462_v27  ;;  %v2464_v43 = vsub.f32 %v2448_v3, %v1892_v15  ;;  %v965_v40 = vadd.f32 %v2186_v63, %v964_v7  ;;  %v1073_v6 = vpack.c.bf16 %v2058_v60, %v2042_v41  ;;  %v2226_v22 = vpop.eup %1491 }
 0x20f   : > { %v930_v19 = vmul.f32 1.442695, %v2463_v1  ;;  %1517 = vpow2.f32 %v926_v10  ;;  %v2465_v2 = vsub.f32 %v2450_v12, %v1888_v11  ;;  %v1002_v42 = vadd.f32 %v2194_v14, %v1001_v36  ;;  %1111 = vmatpush1.bf16.msra.mxu1 %v1074_v53  ;;  %v2232_v8 = vpop.eup %1493 }
 0x210   : > { %v932_v39 = vmul.f32 1.442695, %v2464_v43  ;;  %1519 = vpow2.f32 %v928_v9  ;;  %v936_v15 = vmul.f32 1.442695, %v811_v34  ;;  %v966_v3 = vadd.f32 %v2202_v47, %v965_v40  ;;  %1112 = vmatprep.subr.bf16.mxu1 %v1073_v6  ;;  %v2235_v31 = vpop.eup %1495 }
 0x211   : > { %v934_v62 = vmul.f32 1.442695, %v2465_v2  ;;  %1521 = vpow2.f32 %v930_v19  ;;  %v938_v41 = vmul.f32 1.442695, %v812_v55  ;;  %v1003_v60 = vadd.f32 %v2210_v4, %v1002_v42  ;;  %v2240_v12 = vpop.eup %1497 }
 0x212   : > { %v1072_v11 = vpack.c.bf16 %v2050_v28, %v2034_v23  ;;  %1523 = vpow2.f32 %v932_v39  ;;  %v940_v32 = vmul.f32 1.442695, %v813_v26  ;;  %v967_v29 = vadd.f32 %v2218_v50, %v966_v3  ;;  %v2245_v17 = vpop.eup %1499 }
 0x213   : > { %v1071_v34 = vpack.c.bf16 %v2029_v58, %v2019_v51  ;;  %1525 = vpow2.f32 %v934_v62  ;;  %v1004_v20 = vadd.f32 %v2226_v22, %v1003_v60  ;;  %v2248_v21 = vpop.eup %1501  ;;  %v1070_v51 = vpack.c.bf16 %v2024_v57, %v2014_v33 }
 0x214   : > { %1113 = vmatpush1.bf16.msra.mxu1 %v1072_v11  ;;  %1527 = vpow2.f32 %v936_v15  ;;  %v968_v28 = vadd.f32 %v2232_v8, %v967_v29  ;;  %v2251_v23 = vpop.eup %1503  ;;  %v1069_v45 = vpack.c.bf16 %v2009_v35, %v1999_v44  ;;  %v1068_v57 = vpack.c.bf16 %v2004_v61, %v1994_v56 }
 0x215   : > { %1114 = vmatprep.subr.bf16.mxu1 %v1071_v34  ;;  %1529 = vpow2.f32 %v938_v41  ;;  %v1005_v0 = vadd.f32 %v2235_v31, %v1004_v20  ;;  %v2256_v58 = vpop.eup %1505  ;;  %v1067_v35 = vpack.c.bf16 %v1988_v52, %v1976_v48  ;;  %v1066_v61 = vpack.c.bf16 %v1982_v30, %v1970_v46  ;;  %v2467_v46 = vld [vmem:[#allocation9_spill] sm:$0xff]  ;;  %v2468_v30 = vld [vmem:[#allocation7_spill] sm:$0xff] }
 0x216   : > { %1531 = vpow2.f32 %v940_v32  ;;  %v969_v55 = vadd.f32 %v2240_v12, %v968_v28  ;;  %v2261_v10 = vpop.eup %1507  ;;  %v2466_v3 = vpack.c.bf16 %v1964_v25, %v1952_v37  ;;  %v2469_v28 = vpack.c.bf16 %v2467_v46, %v2468_v30  ;;  %v1197_v46 = vld [vmem:[%s303_s5 + $0x8] sm:$0xff] }
 0x217   : > { %v1006_v24 = vadd.f32 %v2245_v17, %v1005_v0  ;;  %v1510_v26 = vpop.eup %1509 }
 0x218   : > { %1115 = vmatpush1.bf16.msra.mxu1 %v1070_v51  ;;  %v970_v27 = vadd.f32 %v2248_v21, %v969_v55  ;;  %v1512_v9 = vpop.eup %1511 }
 0x219   : > { %1116 = vmatprep.subr.bf16.mxu1 %v1069_v45  ;;  %v1007_v33 = vadd.f32 %v2251_v23, %v1006_v24  ;;  %v1514_v7 = vpop.eup %1513  ;;  %v2470_v45 = vld [vmem:[#allocation32_spill] sm:$0xff]  ;;  %v2471_v24 = vld [vmem:[#allocation33_spill] sm:$0xff] }
 0x21a   : > { %v971_v1 = vadd.f32 %v2256_v58, %v970_v27  ;;  %v1516_v44 = vpop.eup %1515  ;;  %v1090_v36 = vpack.c.bf16 %v1514_v7, %v1510_v26 }
 0x21b   : > { %v1008_v19 = vadd.f32 %v2261_v10, %v1007_v33  ;;  %v1091_v39 = vpack.c.bf16 %v1516_v44, %v1512_v9 }
 0x21c   : > { %1117 = vmatpush1.bf16.msra.mxu1 %v1068_v57  ;;  %v1518_v53 = vpop.eup %1517  ;;  %v972_v43 = vadd.f32 %v1510_v26, %v971_v1  ;;  %v2472_v26 = vsub.f32 %v2470_v45, %v2471_v24  ;;  %v1198_v45 = vld [vmem:[%s303_s5 + $0x10] sm:$0xff] }
 0x21d   : > { %1118 = vmatprep.subr.bf16.mxu1 %v1067_v35  ;;  %v1520_v40 = vpop.eup %1519  ;;  %v1009_v6 = vadd.f32 %v1512_v9, %v1008_v19 }
 0x21e   : > { %v1522_v56 = vpop.eup %1521  ;;  %v973_v2 = vadd.f32 %v1514_v7, %v972_v43  ;;  %v943_v27 = vmul.f32 1.442695, %v2472_v26 }
 0x21f   : > { %v1524_v62 = vpop.eup %1523  ;;  %v1010_v42 = vadd.f32 %v1516_v44, %v1009_v6  ;;  %v1092_v48 = vpack.c.bf16 %v1522_v56, %v1518_v53 }
 0x220   : > { %1119 = vmatpush1.bf16.msra.mxu1 %v1066_v61  ;;  %v1526_v52 = vpop.eup %1525  ;;  %v974_v15 = vadd.f32 %v1518_v53, %v973_v2  ;;  %v1093_v41 = vpack.c.bf16 %v1524_v62, %v1520_v40  ;;  %1533 = vpow2.f32 %v943_v27  ;;  %v1089_v53 = vpack.c.bf16 %v2261_v10, %v2251_v23  ;;  %v945_v10 = vld [vmem:[#allocation3] sm:$0x3] }
 0x221   : > { %1120 = vmatprep.subr.bf16.mxu1 %v2466_v3  ;;  %v1528_v60 = vpop.eup %1527  ;;  %v1011_v11 = vadd.f32 %v1520_v40, %v1010_v42  ;;  %v1088_v61 = vpack.c.bf16 %v2256_v58, %v2248_v21  ;;  %v1087_v2 = vpack.c.bf16 %v2245_v17, %v2235_v31  ;;  %v1086_v42 = vpack.c.bf16 %v2240_v12, %v2232_v8 }
 0x222   : > { %v1530_v32 = vpop.eup %1529  ;;  %v975_v29 = vadd.f32 %v1522_v56, %v974_v15  ;;  %v1084_v17 = vpack.c.bf16 %v2218_v50, %v2202_v47  ;;  %v1083_v58 = vpack.c.bf16 %v2194_v14, %v2178_v5  ;;  %v2475_v14 = vld [vmem:[#allocation34_spill] sm:$0xff]  ;;  %v2476_v50 = vld [vmem:[#allocation35_spill] sm:$0xff] }
 0x223   : > { %v1532_v34 = vpop.eup %1531  ;;  %v1012_v20 = vadd.f32 %v1524_v62, %v1011_v11  ;;  %v1094_v0 = vpack.c.bf16 %v1530_v32, %v1526_v52  ;;  %v1196_v11 = vld [vmem:[%s303_s5] sm:$0xff] }
 0x224   : > { %1121 = vmatpush1.bf16.msra.mxu1 %v2469_v28  ;;  %v976_v51 = vadd.f32 %v1526_v52, %v975_v29  ;;  %v1095_v55 = vpack.c.bf16 %v1532_v34, %v1528_v60 }
 0x225   : > { %v1013_v37 = vadd.f32 %v1528_v60, %v1012_v20 }
 0x226   : > { %v977_v25 = vadd.f32 %v1530_v32, %v976_v51  ;;  %1122 = vmatprep.subr.bf16.mxu1 %v1095_v55 }
 0x227   : > { %v1014_v9 = vadd.f32 %v1532_v34, %v1013_v37  ;;  %v1199_v37 = vld [vmem:[%s303_s5 + $0x18] sm:$0xff] }
 0x228   : > { %1123 = vmatpush2.bf16.msra.mxu1 %v1094_v0  ;;  %v978_v33 = vrot.slane %v977_v25, 4 }
 0x229   : > { %1124 = vmatprep.subr.bf16.mxu1 %v1093_v41  ;;  %v1015_v57 = vrot.slane %v1014_v9, 4 }
 0x22a   : > { %v979_v7 = vadd.f32 %v978_v33, %v977_v25 }
 0x22b   : > { %v1016_v1 = vadd.f32 %v1015_v57, %v1014_v9 }
 0x22c   : > { %1125 = vmatpush2.bf16.msra.mxu1 %v1092_v48  ;;  %v980_v35 = vrot.slane %v979_v7, 2  ;;  %v2473_v48 = vld [vmem:[#allocation6_spill] sm:$0xff] }
 0x22d   : > { %1126 = vmatprep.subr.bf16.mxu1 %v1091_v39  ;;  %v1017_v44 = vrot.slane %v1016_v1, 2  ;;  %v1534_v23 = vpop.eup %1533 }
 0x22e   : > { %v981_v19 = vadd.f32 %v980_v35, %v979_v7  ;;  %v946_v21 = vmul.f32 %v1534_v23, %v945_v10  ;;  %v1053_v47 = vrot.slane %v1534_v23, %v2475_v14  ;;  %v1057_v15 = vrot.slane %v1534_v23, %v2476_v50 }
 0x22f   : > { %v1018_v43 = vadd.f32 %v1017_v44, %v1016_v1 }
 0x230   : > { %1127 = vmatpush2.bf16.msra.mxu1 %v1090_v36  ;;  %v982_v40 = vrot.slane %v981_v19, 1  ;;  %v1085_v36 = vpack.c.bf16 %v2226_v22, %v2210_v4  ;;  %v1082_v4 = vpack.c.bf16 %v2186_v63, %v2170_v16  ;;  %v1402_v22 = vld [vmem:[%s1629_s27] ss:$8 sps:$4 sm:$0xff]   ;;  %v1060_v16 = vmul.f32 0.0, %v1053_v47 }
 0x231   : > { %1128 = vmatprep.subr.bf16.mxu1 %v1089_v53  ;;  %v1019_v6 = vrot.slane %v1018_v43, 1  ;;  %v1061_v54 = vmul.f32 0.0, %v1057_v15 }
 0x232   : > { %v983_v56 = vadd.f32 %v982_v40, %v981_v19 }
 0x233   : > { %v1020_v62 = vadd.f32 %v1019_v6, %v1018_v43 }
 0x234   : > { %1129 = vmatpush2.bf16.msra.mxu1 %v1088_v61 }
 0x235   : > { %1130 = vmatprep.subr.bf16.mxu1 %v1087_v2  ;;  %v1023_v39 = vcombine.low %v983_v56, %v1020_v62 }
 0x237   : > { %v1030_v52 = vrot.slane %v1023_v39, %v2473_v48 }
 0x238   : > { %1131 = vmatpush2.bf16.msra.mxu1 %v1086_v42 }
 0x239   : > { %1132 = vmatprep.subr.bf16.mxu1 %v1085_v36  ;;  %v1037_v31 = vrot.slane %v1030_v52, %v2473_v48 }
 0x23b   : > { %v1039_v8 = vadd.f32 %v1037_v31, %v946_v21 }
 0x23c   : > { %1133 = vmatpush2.bf16.msra.mxu1 %v1084_v17 }
 0x23d   : > { %1134 = vmatprep.subr.bf16.mxu1 %v1083_v58  ;;  %1044 = vst.msk [vmem:[#allocation3] sm:$0x3] %vm1679_vm2, %v1039_v8 }
 0x240   : > { %1135 = vmatpush2.bf16.msra.mxu1 %v1082_v4  ;;  %v1190_v59 = vpop.permute.xlu1 %1189 }
 0x241   : > { %1136 = vmatprep.subr.bf16.mxu1 %v1081_v38 }
 0x244   : > { %1137 = vmatpush2.bf16.msra.mxu1 %v1080_v49  ;;  %v1161_v5 = vld [vmem:[#allocation3] sm:$0x3] }
 0x245   : > { %1535 = vrcp.f32 %v1161_v5 }
 0x247   : > { %1139 = vmatmul.mubr.bf16.vlgmr.msra.gmra.mxu1 %v1402_v22 }
 0x252   : > { %v1536_v3 = vpop.eup %1535 }
 0x253   : > { %v1172_v18 = vrot.slane %v1536_v3, %v2475_v14  ;;  %v1176_v60 = vrot.slane %v1536_v3, %v2476_v50 }
 0x307   : > { %v1140_v63 = vpop.f32.mrf.mxu1 }
 0x308   : > { %v1149_v41 = vadd.f32 %v1140_v63, %v1060_v16 }
 0x309   : > { %v1142_v13 = vpop.f32.mrf.mxu1 }
 0x30a   : > { %v1179_v49 = vmul.f32 %v1172_v18, %v1149_v41  ;;  %v1150_v38 = vadd.f32 %v1142_v13, %v1061_v54 }
 0x30b   : > { %v1144_v32 = vpop.f32.mrf.mxu1 }
 0x30c   : > { %v1180_v29 = vmul.f32 %v1176_v60, %v1150_v38  ;;  %v1192_v34 = vmul.f32 %v1190_v59, %v1179_v49  ;;  %v1151_v20 = vadd.f32 %v1144_v32, %v1060_v16 }
 0x30d   : > { %v1146_v30 = vpop.f32.mrf.mxu1 }
 0x30e   : > { %v1193_v28 = vmul.f32 %v1190_v59, %v1180_v29  ;;  %v1200_v0 = vadd.f32 %v1196_v11, %v1192_v34  ;;  %v1181_v51 = vmul.f32 %v1172_v18, %v1151_v20  ;;  %v1152_v55 = vadd.f32 %v1146_v30, %v1061_v54 }
 0x310   : > { %v1201_v24 = vadd.f32 %v1197_v46, %v1193_v28  ;;  %1204 = vst [vmem:[%s313_s8] sm:$0xff] %v1200_v0  ;;  %v1194_v26 = vmul.f32 %v1190_v59, %v1181_v51  ;;  %v1182_v27 = vmul.f32 %v1176_v60, %v1152_v55 }
 0x312   : > { %1205 = vst [vmem:[%s313_s8 + $0x8] sm:$0xff] %v1201_v24  ;;  %v1202_v25 = vadd.f32 %v1198_v45, %v1194_v26  ;;  %v1195_v9 = vmul.f32 %v1190_v59, %v1182_v27 }
 0x314   : > { %1206 = vst [vmem:[%s313_s8 + $0x10] sm:$0xff] %v1202_v25  ;;  %v1203_v33 = vadd.f32 %v1199_v37, %v1195_v9 }
 0x316   : > { %1207 = vst [vmem:[%s313_s8 + $0x18] sm:$0xff] %v1203_v33 }
 0x317 PF: > { %s16_s19 = sadd.s32 1, %s1559_s19   ;;  %s2477_s17 = smov %s1555_s18 }
 0x318   : > { %p13_p5 = scmp.ge.s32.totalorder %s16_s19, 4   ;;  %s2478_s18 = smov %s2480_s3 }
 0x31a   :  { %15 = sbr.rel (!%p13_p5) target bundleno = 3 (0x3), region = 80 }

</bundles_post_ra>
